<compile_context>
chip_gen: v6e
topology: v6e:2x2x1
jax: 0.10.0
libtpu: 0.0.40
codegen_flags: <defaults>
</compile_context>

<pallas_src>
import functools

import jax
import jax.numpy as jnp
from jax import lax
from jax.experimental import pallas as pl
from jax.experimental.pallas import tpu as pltpu


def _round_up(x, m):
    return ((x + m - 1) // m) * m


def _pick_tile(n_pad, cap):
    # largest tile in {512,256,128} that divides n_pad and respects `cap`
    for t in (512, 256, 128):
        if t <= cap and n_pad % t == 0:
            return t
    return 128


def _pad2(a, rows, cols):
    return jnp.pad(a, ((0, rows - a.shape[0]), (0, cols - a.shape[1])))


# ----------------------------------------------------------------------
# Fused GCN-stack kernel
# ----------------------------------------------------------------------
def _fused_gcn_kernel(x_ref, adj_ref, w_ref, b_ref, o_ref,
                      acc_ref, s_ref, h_ref, *, nclass):
    """One grid step.  grid = (layer l, output-row tile i, reduction tile k).

    x_ref   : (tk, P)  f32   node features, k-th row chunk (used only at l==0)
    adj_ref : (tm, tk) bf16  normalized adjacency tile A[i, k]
    w_ref   : (P, P)   bf16  layer-l weight (zero padded)
    b_ref   : (1, P)   f32   layer-l bias   (zero padded)
    o_ref   : (tm, P)  f32   final log-probs, row tile i (written at last layer)
    acc_ref : (tm, P)  f32   k-accumulator for A @ support
    s_ref   : (N, P)   bf16  cached support = H_prev @ W_l for current layer
    h_ref   : (N, P)   f32   activations of the previous layer
    """
    l = pl.program_id(0)
    i = pl.program_id(1)
    k = pl.program_id(2)
    nl = pl.num_programs(0)
    nk = pl.num_programs(2)

    tm, tk = adj_ref.shape
    krow = pl.multiple_of(k * tk, tk)

    # --- Phase 1 (first row tile only): build & cache this layer's support
    #     chunk  S[k] = H_prev[k] @ W_l  (bf16 in / f32 acc / bf16 cache).
    @pl.when(i == 0)
    def _():
        h_prev = jnp.where(l == 0, x_ref[...], h_ref[pl.ds(krow, tk), :])
        s = jnp.dot(h_prev.astype(jnp.bfloat16), w_ref[...],
                    preferred_element_type=jnp.float32)
        s_ref[pl.ds(krow, tk), :] = s.astype(jnp.bfloat16)

    # --- Phase 2: accumulate  A[i, k] @ S[k]  on the MXU (f32 accumulator).
    @pl.when(k == 0)
    def _():
        acc_ref[...] = jnp.zeros_like(acc_ref)

    acc_ref[...] += jnp.dot(adj_ref[...], s_ref[pl.ds(krow, tk), :],
                            preferred_element_type=jnp.float32)

    # --- Phase 3: epilogue once the reduction over k is complete.
    irow = pl.multiple_of(i * tm, tm)
    last_k = k == nk - 1

    @pl.when(last_k & (l < nl - 1))
    def _():  # hidden layer: bias + ReLU, keep activations resident in VMEM
        h_ref[pl.ds(irow, tm), :] = jnp.maximum(acc_ref[...] + b_ref[...], 0.0)

    @pl.when(last_k & (l == nl - 1))
    def _():  # output layer: bias + masked log_softmax, lane-dense store
        logits = acc_ref[...] + b_ref[...]
        lane = lax.broadcasted_iota(jnp.int32, logits.shape, 1)
        logits = jnp.where(lane < nclass, logits, -jnp.inf)  # mask padded lanes
        m = jnp.max(logits, axis=-1, keepdims=True)
        shifted = logits - m
        lse = jnp.log(jnp.sum(jnp.exp(shifted), axis=-1, keepdims=True))
        o_ref[...] = (shifted - lse).astype(o_ref.dtype)


# ----------------------------------------------------------------------
# Wrapper: pad to lane-dense shapes, stack params, one pallas_call
# ----------------------------------------------------------------------
def gnn_forward(x, adj, weights, biases):
    n = x.shape[0]
    nl = len(weights)
    nclass = weights[-1].shape[1]

    feat_dims = [w.shape[0] for w in weights] + [nclass]
    p = _round_up(max(feat_dims), 128)          # lane-dense channel width
    n_pad = _round_up(max(n, 1), 128)
    tm = _pick_tile(n_pad, 256)                 # sized so the double-buffered
    tk = _pick_tile(n_pad, 512)                 # adj tiles fit v7x's 64 MiB VMEM

    x_p = _pad2(x.astype(jnp.float32), n_pad, p)
    adj_p = _pad2(adj.astype(jnp.float32), n_pad, n_pad).astype(jnp.bfloat16)
    w_stack = jnp.stack([_pad2(w.astype(jnp.float32), p, p)
                         for w in weights]).astype(jnp.bfloat16)      # (nl,P,P)
    b_stack = jnp.stack([jnp.pad(b.astype(jnp.float32),
                                 (0, p - b.shape[0]))[None, :]
                         for b in biases])                            # (nl,1,P)

    grid = (nl, n_pad // tm, n_pad // tk)

    cost = pl.CostEstimate(
        flops=int(2 * nl * (n_pad * p * p + n_pad * n_pad * p)),
        transcendentals=int(n_pad * (p + 1)),
        bytes_accessed=int(nl * n_pad * n_pad * 2          # adjacency (bf16)
                           + n_pad * p * 8                  # x in + logits out
                           + nl * p * (p * 2 + 4)),         # weights + biases
    )

    out = pl.pallas_call(
        functools.partial(_fused_gcn_kernel, nclass=nclass),
        out_shape=jax.ShapeDtypeStruct((n_pad, p), jnp.float32),
        grid_spec=pltpu.PrefetchScalarGridSpec(
            num_scalar_prefetch=0,
            grid=grid,
            in_specs=[
                # x: only fetched while building layer-0's support cache
                pl.BlockSpec(
                    (tk, p),
                    lambda l, i, k: (jnp.where((l == 0) & (i == 0), k, 0), 0)),
                # adjacency tile A[i, k] — the only large streamed operand
                pl.BlockSpec((tm, tk), lambda l, i, k: (i, k)),
                # per-layer weight / bias, resident for the whole layer
                pl.BlockSpec((None, p, p), lambda l, i, k: (l, 0, 0)),
                pl.BlockSpec((None, 1, p), lambda l, i, k: (l, 0, 0)),
            ],
            # output only advances during the last layer (avoids dead writebacks)
            out_specs=pl.BlockSpec(
                (tm, p), lambda l, i, k: (jnp.where(l == nl - 1, i, 0), 0)),
            scratch_shapes=[
                pltpu.VMEM((tm, p), jnp.float32),       # k-reduction accumulator
                pltpu.VMEM((n_pad, p), jnp.bfloat16),   # per-layer support cache
                pltpu.VMEM((n_pad, p), jnp.float32),    # resident activations
            ],
        ),
        compiler_params=pltpu.CompilerParams(
            # layers / row tiles communicate through resident VMEM scratch, so
            # the grid must execute sequentially on a single core.
            dimension_semantics=("arbitrary", "arbitrary", "arbitrary")),
        cost_estimate=cost,
    )(x_p, adj_p, w_stack, b_stack)

    return out[:n, :nclass]


# ----------------------------------------------------------------------
# BaseGNN (GCN instantiation of the abstract layer stack), eval mode
# ----------------------------------------------------------------------
class BaseGNNPallas:
    def __init__(self, nfeat, nhid, nclass, nlayers, key):
        self.nlayers = nlayers
        dims = [nfeat] + [nhid] * (nlayers - 1) + [nclass]
        self.weights, self.biases = [], []
        for i in range(nlayers):
            key, wk, bk = jax.random.split(key, 3)
            fan_in, fan_out = dims[i], dims[i + 1]
            bound = float(1.0 / (fan_in ** 0.5))
            w = jax.random.uniform(wk, (fan_in, fan_out), jnp.float32,
                                   minval=-bound, maxval=bound)
            b = jax.random.uniform(bk, (fan_out,), jnp.float32,
                                   minval=-bound, maxval=bound)
            self.weights.append(w)
            self.biases.append(b)

    def forward(self, x, adj):
        # with_bn=False, with_relu=True, dropout=0 (eval mode)
        return gnn_forward(x, adj, self.weights, self.biases)


# ----------------------------------------------------------------------
def _reference_forward(weights, biases, x, adj):
    # Plain-JAX reference that mirrors the kernel numerics
    # (bf16 MXU inputs, f32 accumulation).
    adj_bf = adj.astype(jnp.bfloat16)
    h = x.astype(jnp.float32)
    nl = len(weights)
    for l in range(nl):
        s = jnp.dot(h.astype(jnp.bfloat16), weights[l].astype(jnp.bfloat16),
                    preferred_element_type=jnp.float32)
        h = jnp.dot(adj_bf, s.astype(jnp.bfloat16),
                    preferred_element_type=jnp.float32) + biases[l]
        if l != nl - 1:
            h = jnp.maximum(h, 0.0)
    return jax.nn.log_softmax(h, axis=1)


if __name__ == "__main__":
    key = jax.random.PRNGKey(0)
    k_feat, k_adj, k_model = jax.random.split(key, 3)

    # N not a multiple of 128 (exercises row padding); N_pad=384 gives a
    # (nlayers, 3, 3) grid (exercises k-accumulation + the support cache).
    n_nodes, nfeat, nhid, nclass, nlayers = 300, 32, 32, 8, 2

    x = jax.random.normal(k_feat, (n_nodes, nfeat), jnp.float32)

    # symmetric normalized dense adjacency with self-loops
    a = (jax.random.uniform(k_adj, (n_nodes, n_nodes)) > 0.95).astype(jnp.float32)
    a = jnp.maximum(a, a.T) + jnp.eye(n_nodes, dtype=jnp.float32)
    d_inv_sqrt = 1.0 / jnp.sqrt(jnp.sum(a, axis=1))
    adj = a * d_inv_sqrt[:, None] * d_inv_sqrt[None, :]

    model = BaseGNNPallas(nfeat, nhid, nclass, nlayers, k_model)

    out = jax.block_until_ready(model.forward(x, adj))
    ref = _reference_forward(model.weights, model.biases, x, adj)

    assert out.shape == (n_nodes, nclass)
    assert bool(jnp.all(jnp.isfinite(out)))
    max_err = float(jnp.max(jnp.abs(out - ref)))
    assert max_err < 5e-3, f"max abs error vs reference = {max_err}"

    # TODO(synk): with_bn=True (BatchNorm), training-time dropout, the
    # list-of-adjacency branch and output_layer_features return path are not
    # implemented (eval-mode dense-adjacency semantics only).
    print("KERNEL_OK")
</pallas_src>

<mosaic_0001>
module attributes {stable_mosaic.version = 11 : i64} {
  func.func @_fused_gcn_kernel(%arg0: i32, %arg1: i32, %arg2: i32, %arg3: memref<128x128xf32, #tpu.memory_space<vmem>>, %arg4: memref<128x128xbf16, #tpu.memory_space<vmem>>, %arg5: memref<1x128x128xbf16, #tpu.memory_space<vmem>>, %arg6: memref<1x1x128xf32, #tpu.memory_space<vmem>>, %arg7: memref<128x128xf32, #tpu.memory_space<vmem>>, %arg8: memref<128x128xf32, #tpu.memory_space<vmem>>, %arg9: memref<384x128xbf16, #tpu.memory_space<vmem>>, %arg10: memref<384x128xf32, #tpu.memory_space<vmem>>) attributes {dimension_semantics = [#tpu.dimension_semantics<arbitrary>, #tpu.dimension_semantics<arbitrary>, #tpu.dimension_semantics<arbitrary>], iteration_bounds = array<i64: 2, 3, 3>, scalar_prefetch = 0 : i64, scratch_operands = 3 : i64, tpu.core_type = #tpu.core_type<tc>, window_params = [{transform_indices = @transform_0, window_bounds = array<i64: 128, 128>}, {transform_indices = @transform_1, window_bounds = array<i64: 128, 128>}, {transform_indices = @transform_2, window_bounds = array<i64: 1, 128, 128>}, {transform_indices = @transform_3, window_bounds = array<i64: 1, 1, 128>}, {transform_indices = @transform_4, window_bounds = array<i64: 128, 128>}]} {
    %c128_i32 = arith.constant 128 : i32
    %0 = arith.muli %arg2, %c128_i32 : i32
    %1 = tpu.assume_multiple %0, 128 : i32
    %c0_i32 = arith.constant 0 : i32
    %2 = arith.cmpi eq, %arg1, %c0_i32 : i32
    %3 = arith.extui %2 : i1 to i32
    %c0_i32_0 = arith.constant 0 : i32
    %4 = arith.cmpi ne, %3, %c0_i32_0 : i32
    scf.if %4 {
      %c0_i32_13 = arith.constant 0 : i32
      %26 = arith.cmpi eq, %arg0, %c0_i32_13 : i32
      %c0_14 = arith.constant 0 : index
      %c0_15 = arith.constant 0 : index
      %27 = vector.load %arg3[%c0_14, %c0_15] : memref<128x128xf32, #tpu.memory_space<vmem>>, vector<128x128xf32>
      %28 = arith.index_cast %1 : i32 to index
      %c0_16 = arith.constant 0 : index
      %29 = vector.load %arg10[%28, %c0_16] : memref<384x128xf32, #tpu.memory_space<vmem>>, vector<128x128xf32>
      %30 = arith.select %26, %27, %29 : vector<128x128xf32>
      %31 = arith.truncf %30 : vector<128x128xf32> to vector<128x128xbf16>
      %c0_17 = arith.constant 0 : index
      %c0_18 = arith.constant 0 : index
      %c0_19 = arith.constant 0 : index
      %32 = vector.load %arg5[%c0_17, %c0_18, %c0_19] : memref<1x128x128xbf16, #tpu.memory_space<vmem>>, vector<1x128x128xbf16>
      %33 = vector.shape_cast %32 : vector<1x128x128xbf16> to vector<128x128xbf16>
      %cst_20 = arith.constant dense<0.000000e+00> : vector<128x128xf32>
      %34 = tpu.matmul %31, %33, %cst_20 {dimension_numbers = #tpu.dot_dimension_numbers<[1], [0], [0], [1], [0, 0, 1, 1], [], []>} : vector<128x128xbf16>, vector<128x128xbf16>, vector<128x128xf32> -> vector<128x128xf32>
      %35 = arith.truncf %34 : vector<128x128xf32> to vector<128x128xbf16>
      %36 = arith.index_cast %1 : i32 to index
      %c0_21 = arith.constant 0 : index
      %37 = vector.load %arg9[%36, %c0_21] : memref<384x128xbf16, #tpu.memory_space<vmem>>, vector<128x128xbf16>
      tpu.vector_store %arg9[%36, %c0_21], %35 {strides = array<i32>} : memref<384x128xbf16, #tpu.memory_space<vmem>>, vector<128x128xbf16>,
    } else {
    }
    %c0_i32_1 = arith.constant 0 : i32
    %5 = arith.cmpi eq, %arg2, %c0_i32_1 : i32
    %6 = arith.extui %5 : i1 to i32
    %c0_i32_2 = arith.constant 0 : i32
    %7 = arith.cmpi ne, %6, %c0_i32_2 : i32
    scf.if %7 {
      %cst_13 = arith.constant 0.000000e+00 : f32
      %26 = vector.broadcast %cst_13 : f32 to vector<128x128xf32>
      %c0_14 = arith.constant 0 : index
      %c0_15 = arith.constant 0 : index
      %27 = vector.load %arg8[%c0_14, %c0_15] : memref<128x128xf32, #tpu.memory_space<vmem>>, vector<128x128xf32>
      tpu.vector_store %arg8[%c0_14, %c0_15], %26 {strides = array<i32>} : memref<128x128xf32, #tpu.memory_space<vmem>>, vector<128x128xf32>,
    } else {
    }
    %c0 = arith.constant 0 : index
    %c0_3 = arith.constant 0 : index
    %8 = vector.load %arg8[%c0, %c0_3] : memref<128x128xf32, #tpu.memory_space<vmem>>, vector<128x128xf32>
    %c0_4 = arith.constant 0 : index
    %c0_5 = arith.constant 0 : index
    %9 = vector.load %arg4[%c0_4, %c0_5] : memref<128x128xbf16, #tpu.memory_space<vmem>>, vector<128x128xbf16>
    %10 = arith.index_cast %1 : i32 to index
    %c0_6 = arith.constant 0 : index
    %11 = vector.load %arg9[%10, %c0_6] : memref<384x128xbf16, #tpu.memory_space<vmem>>, vector<128x128xbf16>
    %cst = arith.constant dense<0.000000e+00> : vector<128x128xf32>
    %12 = tpu.matmul %9, %11, %cst {dimension_numbers = #tpu.dot_dimension_numbers<[1], [0], [0], [1], [0, 0, 1, 1], [], []>} : vector<128x128xbf16>, vector<128x128xbf16>, vector<128x128xf32> -> vector<128x128xf32>
    %13 = arith.addf %8, %12 : vector<128x128xf32>
    %c0_7 = arith.constant 0 : index
    %c0_8 = arith.constant 0 : index
    %14 = vector.load %arg8[%c0_7, %c0_8] : memref<128x128xf32, #tpu.memory_space<vmem>>, vector<128x128xf32>
    tpu.vector_store %arg8[%c0_7, %c0_8], %13 {strides = array<i32>} : memref<128x128xf32, #tpu.memory_space<vmem>>, vector<128x128xf32>,
    %c128_i32_9 = arith.constant 128 : i32
    %15 = arith.muli %arg1, %c128_i32_9 : i32
    %16 = tpu.assume_multiple %15, 128 : i32
    %c2_i32 = arith.constant 2 : i32
    %17 = arith.cmpi eq, %arg2, %c2_i32 : i32
    %c1_i32 = arith.constant 1 : i32
    %18 = arith.cmpi slt, %arg0, %c1_i32 : i32
    %19 = arith.andi %17, %18 : i1
    %20 = arith.extui %19 : i1 to i32
    %c0_i32_10 = arith.constant 0 : i32
    %21 = arith.cmpi ne, %20, %c0_i32_10 : i32
    scf.if %21 {
      %c0_13 = arith.constant 0 : index
      %c0_14 = arith.constant 0 : index
      %26 = vector.load %arg8[%c0_13, %c0_14] : memref<128x128xf32, #tpu.memory_space<vmem>>, vector<128x128xf32>
      %c0_15 = arith.constant 0 : index
      %c0_16 = arith.constant 0 : index
      %c0_17 = arith.constant 0 : index
      %27 = vector.load %arg6[%c0_15, %c0_16, %c0_17] : memref<1x1x128xf32, #tpu.memory_space<vmem>>, vector<1x1x128xf32>
      %28 = vector.shape_cast %27 : vector<1x1x128xf32> to vector<1x128xf32>
      %29 = vector.broadcast %28 : vector<1x128xf32> to vector<128x128xf32>
      %30 = arith.addf %26, %29 : vector<128x128xf32>
      %cst_18 = arith.constant 0.000000e+00 : f32
      %31 = vector.broadcast %cst_18 : f32 to vector<128x128xf32>
      %32 = arith.maximumf %30, %31 : vector<128x128xf32>
      %33 = arith.index_cast %16 : i32 to index
      %c0_19 = arith.constant 0 : index
      %34 = vector.load %arg10[%33, %c0_19] : memref<384x128xf32, #tpu.memory_space<vmem>>, vector<128x128xf32>
      tpu.vector_store %arg10[%33, %c0_19], %32 {strides = array<i32>} : memref<384x128xf32, #tpu.memory_space<vmem>>, vector<128x128xf32>,
    } else {
    }
    %c1_i32_11 = arith.constant 1 : i32
    %22 = arith.cmpi eq, %arg0, %c1_i32_11 : i32
    %23 = arith.andi %17, %22 : i1
    %24 = arith.extui %23 : i1 to i32
    %c0_i32_12 = arith.constant 0 : i32
    %25 = arith.cmpi ne, %24, %c0_i32_12 : i32
    scf.if %25 {
      %c0_13 = arith.constant 0 : index
      %c0_14 = arith.constant 0 : index
      %26 = vector.load %arg8[%c0_13, %c0_14] : memref<128x128xf32, #tpu.memory_space<vmem>>, vector<128x128xf32>
      %c0_15 = arith.constant 0 : index
      %c0_16 = arith.constant 0 : index
      %c0_17 = arith.constant 0 : index
      %27 = vector.load %arg6[%c0_15, %c0_16, %c0_17] : memref<1x1x128xf32, #tpu.memory_space<vmem>>, vector<1x1x128xf32>
      %28 = vector.shape_cast %27 : vector<1x1x128xf32> to vector<1x128xf32>
      %29 = vector.broadcast %28 : vector<1x128xf32> to vector<128x128xf32>
      %30 = arith.addf %26, %29 : vector<128x128xf32>
      %31 = tpu.iota {dimensions = array<i32: 1>} : vector<128x128xi32>
      %c8_i32 = arith.constant 8 : i32
      %32 = vector.broadcast %c8_i32 : i32 to vector<128x128xi32>
      %33 = arith.cmpi slt, %31, %32 : vector<128x128xi32>
      %cst_18 = arith.constant 0xFF800000 : f32
      %34 = vector.broadcast %cst_18 : f32 to vector<128x128xf32>
      %35 = arith.select %33, %30, %34 : vector<128x128xi1>, vector<128x128xf32>
      %cst_19 = arith.constant dense<0xFF800000> : vector<128xf32>
      %36 = vector.multi_reduction <maximumf>, %35, %cst_19 [1] : vector<128x128xf32> to vector<128xf32>
      %37 = vector.shape_cast %36 : vector<128xf32> to vector<128x1xf32>
      %38 = vector.broadcast %37 : vector<128x1xf32> to vector<128x128xf32>
      %39 = arith.subf %35, %38 : vector<128x128xf32>
      %40 = math.exp %39 : vector<128x128xf32>
      %cst_20 = arith.constant dense<0.000000e+00> : vector<128xf32>
      %41 = vector.multi_reduction <add>, %40, %cst_20 [1] : vector<128x128xf32> to vector<128xf32>
      %42 = vector.shape_cast %41 : vector<128xf32> to vector<128x1xf32>
      %43 = math.log %42 : vector<128x1xf32>
      %44 = vector.broadcast %43 : vector<128x1xf32> to vector<128x128xf32>
      %45 = arith.subf %39, %44 : vector<128x128xf32>
      %c0_21 = arith.constant 0 : index
      %c0_22 = arith.constant 0 : index
      %46 = vector.load %arg7[%c0_21, %c0_22] : memref<128x128xf32, #tpu.memory_space<vmem>>, vector<128x128xf32>
      tpu.vector_store %arg7[%c0_21, %c0_22], %45 {strides = array<i32>} : memref<128x128xf32, #tpu.memory_space<vmem>>, vector<128x128xf32>,
    } else {
    }
    return
  }
  func.func @transform_0(%arg0: i32, %arg1: i32, %arg2: i32) -> (i32, i32) {
    %c0_i32 = arith.constant 0 : i32
    %0 = arith.cmpi eq, %arg0, %c0_i32 : i32
    %c0_i32_0 = arith.constant 0 : i32
    %1 = arith.cmpi eq, %arg1, %c0_i32_0 : i32
    %2 = arith.andi %0, %1 : i1
    %c0_i32_1 = arith.constant 0 : i32
    %3 = arith.select %2, %arg2, %c0_i32_1 : i32
    %c0_i32_2 = arith.constant 0 : i32
    %c0_i32_3 = arith.constant 0 : i32
    return %3, %c0_i32_2 : i32, i32
  }
  func.func @transform_1(%arg0: i32, %arg1: i32, %arg2: i32) -> (i32, i32) {
    %c0_i32 = arith.constant 0 : i32
    return %arg1, %arg2 : i32, i32
  }
  func.func @transform_2(%arg0: i32, %arg1: i32, %arg2: i32) -> (i32, i32, i32) {
    %c0_i32 = arith.constant 0 : i32
    %c0_i32_0 = arith.constant 0 : i32
    %c0_i32_1 = arith.constant 0 : i32
    return %arg0, %c0_i32, %c0_i32_0 : i32, i32, i32
  }
  func.func @transform_3(%arg0: i32, %arg1: i32, %arg2: i32) -> (i32, i32, i32) {
    %c0_i32 = arith.constant 0 : i32
    %c0_i32_0 = arith.constant 0 : i32
    %c0_i32_1 = arith.constant 0 : i32
    return %arg0, %c0_i32, %c0_i32_0 : i32, i32, i32
  }
  func.func @transform_4(%arg0: i32, %arg1: i32, %arg2: i32) -> (i32, i32) {
    %c1_i32 = arith.constant 1 : i32
    %0 = arith.cmpi eq, %arg0, %c1_i32 : i32
    %c0_i32 = arith.constant 0 : i32
    %1 = arith.select %0, %arg1, %c0_i32 : i32
    %c0_i32_0 = arith.constant 0 : i32
    %c0_i32_1 = arith.constant 0 : i32
    return %1, %c0_i32_0 : i32, i32
  }
}

</mosaic_0001>

<bundles_post_ra>
// kernel: tpu_custom_call.1
= control target key start
LH: loop header
LB: loop body
LE: loop exit
PB: predicated region body
PF: predicated region fallthrough
CT: control target
= control target key end

     0   :  { %s2976_s0 = inlined_call_operand.hbm [shape: f32[384,128], index: 0, kind: input, shape index: {}]   ;;  %s2977_s1 = inlined_call_operand.hbm [shape: bf16[384,384], index: 1, kind: input, shape index: {}]   ;;  %s2978_s2 = inlined_call_operand.hbm [shape: bf16[2,128,128], index: 2, kind: input, shape index: {}]   ;;  %s2979_s3 = inlined_call_operand.vmem [shape: f32[2,1,128], index: 3, kind: input, shape index: {}]   ;;  %s2980_s4 = inlined_call_operand.hbm [shape: f32[384,128], index: 4, kind: output, shape index: {}]  }
   0x1   :  { %3009 = sst [smem:[#allocation33_spill]] %s2977_s1 }
   0x2   :  { %3010 = sst [smem:[#allocation34_spill]] %s2978_s2 }
   0x3   :  { %3011 = sst [smem:[#allocation35_spill]] %s2979_s3 }
   0x4   :  { %3012 = sst [smem:[#allocation36_spill]] %s2980_s4 }
   0x5   :  { %9 = vsyncpa [#allocation6], 0 }
   0x6   :  { %11 = vsyncpa [#allocation6 + $0x1], 0 }
   0x7   :  { %12 = vsyncpa [#allocation9], 0 }
   0x8   :  { %14 = vsyncpa [#allocation9 + $0x1], 0 }
   0x9   :  { %15 = vsyncpa [#allocation7], 0 }
   0xa   :  { %17 = vsyncpa [#allocation7 + $0x1], 0  ;;  %s2311_s15 = smov 0   ;;  %s2313_s16 = smov 0  }
   0xb   :  { %s2315_s17 = smov 0   ;;  %s2317_s18 = smov 0  }
   0xc   :  { %s2319_s19 = smov 0   ;;  %s2321_s20 = smov 0  }
   0xd   :  { %s2323_s21 = smov 0   ;;  %s2325_s22 = smov 0  }
   0xe   :  { %s2327_s23 = smov 0   ;;  %s2329_s24 = smov 0  }
   0xf   :  { %s2331_s25 = smov 0   ;;  %s2333_s26 = smov 0  }
  0x10   :  { %s2335_s27 = smov 0   ;;  %s2337_s28 = smov 0  }
  0x11   :  { %s2339_s29 = smov 0   ;;  %s2341_s30 = smov 0  }
  0x12   :  { %s2343_s5 = smov 0   ;;  %s2345_s6 = smov 0  }
  0x13   :  { %s2347_s7 = smov 0  }
  0x14 LB: > { %3013 = sst [smem:[#allocation16_spill]] %s2200_s15  ;;  %s2405_s8 = sadd.s32 4294967295, %s2272_s7   ;;  %s2272_s7 = sphi %s2347_s7, %s23_s7   ;;  %s2268_s6 = sphi %s2345_s6, %s3104_s6   ;;  %s2264_s5 = sphi %s2343_s5, %s3103_s5   ;;  %s2260_s30 = sphi %s2341_s30, %s3091_s30   ;;  %s2256_s29 = sphi %s2339_s29, %s3102_s29   ;;  %s2252_s28 = sphi %s2337_s28, %s3101_s28   ;;  %s2248_s27 = sphi %s2335_s27, %s3090_s27   ;;  %s2244_s26 = sphi %s2333_s26, %s3100_s26   ;;  %s2240_s25 = sphi %s2331_s25, %s3099_s25   ;;  %s2236_s24 = sphi %s2329_s24, %s3089_s24   ;;  %s2232_s23 = sphi %s2327_s23, %s3098_s23   ;;  %s2228_s22 = sphi %s2325_s22, %s3097_s22   ;;  %s2224_s21 = sphi %s2323_s21, %s3087_s21   ;;  %s2220_s20 = sphi %s2321_s20, %s3096_s20   ;;  %s2216_s19 = sphi %s2319_s19, %s3095_s19   ;;  %s2212_s18 = sphi %s2317_s18, %s3094_s18   ;;  %s2208_s17 = sphi %s2315_s17, %s3093_s17   ;;  %s2204_s16 = sphi %s2313_s16, %s3092_s16   ;;  %s2200_s15 = sphi %s2311_s15, %s3086_s15  }
  0x15   : > { %3014 = sst [smem:[#allocation17_spill]] %s2204_s16  ;;  %s1455_s9 = sadd.s32 4294967294, %s2272_s7  }
  0x16   : > { %3015 = sst [smem:[#allocation18_spill]] %s2228_s22  ;;  %p2996_p0 = scmp.eq.s32.totalorder %s2272_s7, 0 }
  0x17   : > { %3016 = sst [smem:[#allocation19_spill]] %s2240_s25  ;;  %p2995_p1 = scmp.eq.s32.totalorder %s2405_s8, 0 }
  0x18   : > { %3017 = sst [smem:[#allocation20_spill]] %s2248_s27  ;;  %p94_p2 = scmp.ne.s32.totalorder %s2232_s23, %s2228_s22 }
  0x19   : > { %3018 = sst [smem:[#allocation21_spill]] %s2252_s28  ;;  %p100_p3 = scmp.ne.s32.totalorder %s2228_s22, %s2224_s21 }
  0x1a   : > { %3019 = sst [smem:[#allocation22_spill]] %s2256_s29  ;;  %p179_p4 = scmp.ne.s32.totalorder %s2208_s17, %s2204_s16 }
  0x1b   : > { %3020 = sst [smem:[#allocation23_spill]] %s2260_s30  ;;  %p96_p5 = por %p94_p2, %p2996_p0 }
  0x1c   : > { %3021 = sst [smem:[#allocation24_spill]] %s2405_s8  ;;  %p180_p6 = scmp.eq.s32.totalorder %s2405_s8, 17 }
  0x1d   : > { %p2421_p7 = por %p100_p3, %p2995_p1  ;;  %p185_p8 = scmp.ne.s32.totalorder %s2204_s16, %s2200_s15 }
  0x1e   : > { %p2427_p9 = por %p180_p6, %p179_p4  ;;  %p186_p10 = scmp.eq.s32.totalorder %s1455_s9, 17 }
  0x1f   : > { %s3022_s11 = scalar_select %p2421_p7, 1, 0 }
  0x20   : > { %s3024_s12 = scalar_select %p2427_p9, 1, 0 }
  0x21   : > { %3023 = sst [smem:[#allocation25_spill]] %s3022_s11  ;;  %p2994_p11 = scmp.lt.s32.totalorder %s2272_s7, 18 }
  0x22   : > { %3025 = sst [smem:[#allocation26_spill]] %s3024_s12  ;;  %p2432_p12 = por %p186_p10, %p185_p8 }
  0x23   : > { %s232_s14 = sand.u32 1, %s2272_s7   ;;  %s234_s21 = sand.u32 1, %s2232_s23  }
  0x24   : > { %s3026_s13 = scalar_select %p2432_p12, 1, 0 }
  0x25   : > { %s1464_s10 = sshll.u32 %s234_s21, 6  ;;  %s1723_s4 = smul.u32 48, %s2264_s5 }
  0x26   : > { %3027 = sst [smem:[#allocation27_spill]] %s3026_s13  ;;  %p2441_p13 = pnand %p2994_p11, %p96_p5 }
  0x27   : > { %s242_s15 = sadd.s32 %s2260_s30, %s1723_s4  ;;  %s236_s3 = scalar_lea.vmem [#allocation8], %s1464_s10 }
  0x28   : > { %s245_s27 = sshll.u32 %s236_s3, 4  ;;  %s1467_s12 = sshll.u32 %s242_s15, 6  ;;  %s246_s27 = int_to_ptr.vmem [resolvable:$true] %s245_s27 }
  0x29   : > { %s3029_s1 = sld [smem:[#allocation33_spill]]  ;;  %p1471_p2 = scmp.ge.s32.totalorder %s2272_s7, 1 }
  0x2a   : > { %s2450_s13 = scalar_lea.sflag [#allocation9], %s232_s14  ;;  %p1998_p3 = pneg %p2441_p13 }
  0x2b   : > { %3030 = sst [smem:[#allocation28_spill]] %s2450_s13  ;;  %s2009_s21 = scalar_lea.vmem %s246_s27, 1024 }
  0x2c   : > { %p2010_p4 = scmp.ne.s32.totalorder %s246_s27, %s2009_s21  ;;  %s2274_s11 = smov [#allocation8]  }
  0x2d   : > { %s2014_s22 = sshll.u32 %s2274_s11, 4  ;;  %s2015_s22 = int_to_ptr.vmem [resolvable:$false] %s2014_s22 }
  0x2e   : > { %p2012_p5 = pnand %p2010_p4, %p1998_p3  ;;  %s2016_s4 = scalar_lea.vmem %s2015_s22, 2048 }
  0x2f   : > { %s244_s16 = scalar_lea.hbm %s3029_s1, %s1467_s12  ;;  %p2017_p8 = scmp.lt.s32.totalorder %s246_s27, %s2015_s22 }
  0x30   : > { %p2013_p6 = pneg %p2012_p5  ;;  %p2018_p10 = scmp.lt.s32.totalorder %s2016_s4, %s2009_s21 }
  0x32   : > { %p2019_p11 = por %p2018_p10, %p2017_p8 }
  0x34   : > { %p2020_p1 = pnand %p2019_p11, %p2013_p6 }
  0x36   : > { %2023 = shalt.err (!%p2020_p1)
}
  0x37   : > { %s2275_s3 = smov 192   ;;  %s2997_s15 = smov 64  }
  0x38   : > { %s2998_s22 = smov 4   ;;  %p280_p1 = scmp.lt.s32.totalorder %s2272_s7, 19 }
  0x39   : > { %1738 = dma.hbm_to_vmem [thread:$0]  (!%p2441_p13), %s244_s16, 1024, %s246_s27, %s2450_s13, %s2275_s3, %s2997_s15, %s2998_s22  }
  0x3a   : > { %p2462_p11 = pnand %p1471_p2, %p280_p1  ;;  %s35_s10 = sadd.s32 1, %s2260_s30 }
  0x3b   : > { %s38_s11 = sadd.s32 1, %s2264_s5  ;;  %p36_p3 = scmp.ge.s32.totalorder %s35_s10, 3 }
  0x3c   : > { %s3031_s29 = scalar_select %p2462_p11, 1, 0 }
  0x3d   : > { %s42_s12 = sadd.s32 1, %s2268_s6  ;;  %p46_p4 = scmp.eq.s32.totalorder %s2268_s6, 0 }
  0x3e   : > { %3032 = sst [smem:[#allocation29_spill]] %s3031_s29  ;;  %p47_p5 = scmp.eq.s32.totalorder %s2264_s5, 0 }
  0x3f   : > { %s3106_s10 = smov (%p36_p3, %s35_s10), 0  ;;  %s3108_s11 = smov (!%p36_p3, %s38_s11), %s2264_s5 }
  0x40   : > { %3033 = sst [smem:[#allocation30_spill]] %s3106_s10  ;;  %p48_p13 = pnand %p47_p5, %p46_p4 }
  0x41   : > { %s59_s16 = sadd.s32 1, %s2244_s26  ;;  %p40_p2 = scmp.ge.s32.totalorder %s3108_s11, 3 }
  0x42   : > { %p66_p6 = scmp.ne.s32.totalorder %s2244_s26, %s2240_s25  ;;  %p72_p3 = scmp.ne.s32.totalorder %s2240_s25, %s2236_s24 }
  0x43   : > { %s2478_s27 = scalar_select %p48_p13, 0, %s2260_s30 }
  0x44   : > { %s3110_s11 = smov (%p40_p2, %s3108_s11), 0  ;;  %s3112_s12 = smov (!%p40_p2, %s42_s12), %s2268_s6 }
  0x45   : > { %p52_p8 = scmp.eq.s32.totalorder %s3110_s11, 0  ;;  %p2486_p10 = por %p2996_p0, %p66_p6 }
  0x46   : > { %p44_p1 = scmp.ge.s32.totalorder %s3112_s12, 2  ;;  %s82_s14 = ssub.s32 %s2264_s5, %s3110_s11 }
  0x47   : > { %s83_s9 = ssub.s32 %s2260_s30, %s3106_s10  ;;  %p3035_p4 = scmp.eq.s32.totalorder %s2405_s8, 0 }
  0x48   : > { %s3114_s12 = smov (%p44_p1, %s3112_s12), 0  ;;  %s84_s4 = sor.u32 %s83_s9, %s82_s14 }
  0x49   : > { %p2500_p5 = por %p3035_p4, %p72_p3  ;;  %p51_p13 = scmp.eq.s32.totalorder %s3114_s12, 0 }
  0x4a   : > { %p85_p2 = scmp.eq.s32.totalorder %s84_s4, 0  ;;  %p162_p6 = scmp.eq.s32.totalorder %s2268_s6, 1 }
  0x4b   : > { %s3036_s21 = scalar_select %p2500_p5, 1, 0 }
  0x4c   : > { %p164_p0 = scmp.eq.s32.totalorder %s3114_s12, 1  ;;  %p53_p12 = pnand %p52_p8, %p51_p13 }
  0x4d   : > { %3037 = sst [smem:[#allocation31_spill]] %s3036_s21  ;;  %s169_s24 = sadd.s32 1, %s2208_s17 }
  0x4e   : > { %s3038_s3 = sadd.s32 1, %s2232_s23  ;;  %s206_s25 = sand.u32 1, %s2244_s26  }
  0x4f   : > { %s2513_s15 = scalar_select %p85_p2, %s2232_s23, %s3038_s3  }
  0x50   : > { %s1457_s22 = scalar_select %p53_p12, 0, %s3106_s10 }
  0x51   : > { %3039 = sst [smem:[#allocation32_spill]] %s2513_s15  ;;  %s1460_s21 = sshll.u32 %s206_s25, 7 }
  0x52   : > { %s163_s1 = scalar_select %p162_p6, %s2264_s5, 0 }
  0x53   : > { %s56_s30 = ssub.s32 %s2478_s27, %s1457_s22  ;;  %s1529_s29 = sshll.u32 %s2478_s27, 11 }
  0x54   : > { %p57_p1 = scmp.eq.s32.totalorder %s56_s30, 0  ;;  %s210_s13 = scalar_lea.vmem [#allocation5], %s1460_s21 }
  0x55   : > { %s165_s14 = scalar_select %p164_p0, %s3110_s11, 0 }
  0x56   : > { %s2521_s9 = scalar_select %p57_p1, %s2244_s26, %s59_s16  }
  0x57   : > { %s166_s4 = ssub.s32 %s163_s1, %s165_s14  ;;  %s222_s2 = sshll.u32 %s210_s13, 4  ;;  %s223_s2 = int_to_ptr.vmem [resolvable:$true] %s222_s2 }
  0x58   : > { %p167_p3 = scmp.eq.s32.totalorder %s166_s4, 0  ;;  %s221_s10 = scalar_lea.hbm %s2976_s0, %s1529_s29 }
  0x59   : > { %p3040_p12 = scmp.lt.s32.totalorder %s2272_s7, 18  ;;  %s207_s1 = scalar_lea.sflag [#allocation6], %s206_s25 }
  0x5a   : > { %s2525_s8 = scalar_select %p167_p3, %s2208_s17, %s169_s24  }
  0x5b   : > { %p2534_p8 = pnand %p3040_p12, %p2486_p10  ;;  %s2037_s22 = scalar_lea.vmem %s223_s2, 2048 }
  0x5c   : > { %p2038_p4 = scmp.ne.s32.totalorder %s223_s2, %s2037_s22  ;;  %s2278_s13 = smov [#allocation5]  }
  0x5d   : > { %p2026_p0 = pneg %p2534_p8  ;;  %s2042_s16 = sshll.u32 %s2278_s13, 4  ;;  %s2043_s16 = int_to_ptr.vmem [resolvable:$false] %s2042_s16 }
  0x5e   : > { %s2044_s15 = scalar_lea.vmem %s2043_s16, 4096  ;;  %p2045_p6 = scmp.lt.s32.totalorder %s223_s2, %s2043_s16 }
  0x5f   : > { %p2040_p13 = pnand %p2038_p4, %p2026_p0  ;;  %p2046_p1 = scmp.lt.s32.totalorder %s2044_s15, %s2037_s22 }
  0x61   : > { %p2041_p2 = pneg %p2040_p13  ;;  %p2047_p3 = por %p2046_p1, %p2045_p6 }
  0x63   : > { %p2048_p9 = pnand %p2047_p3, %p2041_p2 }
  0x65   : > { %2051 = shalt.err (!%p2048_p9)
}
  0x66   : > { %s2279_s29 = smov 128   ;;  %s3042_s25 = sld [smem:[#allocation24_spill]] }
  0x67   : > { %s2280_s27 = smov 8   ;;  %s110_s28 = ssub.s32 %s2268_s6, %s3114_s12 }
  0x68   : > { %1735 = dma.hbm_to_vmem [thread:$0]  (!%p2534_p8), %s221_s10, 2048, %s223_s2, %s207_s1, %s2279_s29, %s2279_s29, %s2280_s27  }
  0x69   : > { %s113_s21 = sadd.s32 1, %s2220_s20  ;;  %p111_p9 = scmp.eq.s32.totalorder %s110_s28, 0 }
  0x6a   : > { %p120_p10 = scmp.ne.s32.totalorder %s2220_s20, %s2216_s19  ;;  %p126_p12 = scmp.ne.s32.totalorder %s2216_s19, %s2212_s18 }
  0x6b   : > { %s257_s24 = sand.u32 1, %s2220_s20   ;;  %p3043_p0 = scmp.eq.s32.totalorder %s2272_s7, 0 }
  0x6c   : > { %s2551_s14 = scalar_select %p111_p9, %s2220_s20, %s113_s21  }
  0x6d   : > { %p122_p4 = por %p120_p10, %p3043_p0  ;;  %p3044_p13 = scmp.eq.s32.totalorder %s3042_s25, 0 }
  0x6e   : > { %s1468_s3 = sshll.u32 %s257_s24, 6  ;;  %s1530_s22 = sshll.u32 %s2268_s6, 10 }
  0x6f   : > { %p2557_p2 = por %p126_p12, %p3044_p13  ;;  %s3046_s2 = sld [smem:[#allocation34_spill]] }
  0x70   : > { %s259_s1 = scalar_lea.vmem [#allocation10], %s1468_s3  ;;  %p3047_p8 = scmp.lt.s32.totalorder %s2272_s7, 18 }
  0x71   : > { %s3045_s4 = scalar_select %p2557_p2, 1, 0 }
  0x72   : > { %s266_s16 = sshll.u32 %s259_s1, 4  ;;  %p2567_p6 = pnand %p3047_p8, %p122_p4  ;;  %s267_s16 = int_to_ptr.vmem [resolvable:$true] %s266_s16 }
  0x73   : > { %s2065_s15 = scalar_lea.vmem %s267_s16, 1024  ;;  %s2281_s29 = smov [#allocation10]  }
  0x74   : > { %p2054_p1 = pneg %p2567_p6  ;;  %p2066_p3 = scmp.ne.s32.totalorder %s267_s16, %s2065_s15 }
  0x75   : > { %s265_s10 = scalar_lea.hbm %s3046_s2, %s1530_s22  ;;  %s2070_s25 = sshll.u32 %s2281_s29, 4  ;;  %s2071_s25 = int_to_ptr.vmem [resolvable:$false] %s2070_s25 }
  0x76   : > { %p2068_p9 = pnand %p2066_p3, %p2054_p1  ;;  %s2072_s27 = scalar_lea.vmem %s2071_s25, 2048 }
  0x77   : > { %p2073_p12 = scmp.lt.s32.totalorder %s267_s16, %s2071_s25  ;;  %p2074_p0 = scmp.lt.s32.totalorder %s2072_s27, %s2065_s15 }
  0x78   : > { %p2069_p10 = pneg %p2068_p9 }
  0x79   : > { %p2075_p13 = por %p2074_p0, %p2073_p12 }
  0x7b   : > { %p2076_p2 = pnand %p2075_p13, %p2069_p10 }
  0x7d   : > { %2079 = shalt.err (!%p2076_p2)
}
  0x7e   : > { %s3049_s28 = smov 4   ;;  %s3050_s21 = smov 64  }
  0x7f   : > { %s3051_s24 = sld [smem:[#allocation28_spill]] }
  0x80   : > { %s3053_s22 = sld [smem:[#allocation19_spill]] (!%p2462_p11) }
  0x81   : > { %284 = sbr.rel (%p2462_p11) target bundleno = 1088 (0x440), region = 36 }
  0x85   : > { %1741 = dma.hbm_to_vmem [thread:$0]  (!%p2567_p6), %s265_s10, 1024, %s267_s16, %s3051_s24, %s3050_s21, %s3050_s21, %s3049_s28  }
  0x86   : > { %s286_s13 = sand.u32 1, %s3053_s22  }
  0x87   : > { %s1472_s2 = sshll.u32 %s286_s13, 7  ;;  %s287_s1 = scalar_lea.sflag [#allocation6], %s286_s13 }
  0x88   : > { %s2582_s29 = scalar_lea.vmem [#allocation5], %s1472_s2 }
  0x89   : > { %2183 = dma.done.wait (%p2500_p5), %s287_s1, 2048  }
  0x8a   : > { %2185 = vsyncadd (%p2500_p5), %s287_s1, 4294965248  ;;  %s3055_s18 = sld [smem:[#allocation24_spill]] }
  0x8b   : > { %s3056_s15 = sld [smem:[#allocation18_spill]] }
  0x90   : > { %s295_s27 = sand.u32 1, %s3055_s18  }
  0x91   : > { %s297_s10 = sand.u32 1, %s3056_s15   ;;  %s296_s28 = scalar_lea.sflag [#allocation9], %s295_s27 }
  0x92   : > { %s1473_s16 = sshll.u32 %s297_s10, 6 }
  0x93   : > { %s2590_s21 = scalar_lea.vmem [#allocation8], %s1473_s16 }
  0x94   : > { %2187 = dma.done.wait (%p2421_p7), %s296_s28, 1024  }
  0x95   : > { %2189 = vsyncadd (%p2421_p7), %s296_s28, 4294966272  ;;  %s306_s24 = sand.u32 1, %s2216_s19   ;;  %p3058_p11 = scmp.ne.s32.totalorder %s3045_s4, 0 }
  0x96   : > { %s1474_s3 = sshll.u32 %s306_s24, 6 }
  0x97   : > { %s2597_s22 = scalar_lea.vmem [#allocation10], %s1474_s3 }
  0x98   : > { %2191 = dma.done.wait (%p3058_p11), %s296_s28, 1024  }
  0x99   : > { %2193 = vsyncadd (%p3058_p11), %s296_s28, 4294966272  ;;  %s3059_s30 = sld [smem:[#allocation17_spill]] }
  0x9a   : > { %s3060_s13 = sld [smem:[#allocation22_spill]] }
  0x9b   : > { %s3061_s2 = sld [smem:[#allocation20_spill]] }
  0x9c   : > { %s3062_s10 = sld [smem:[#allocation35_spill]] }
  0x9d   : > { %s3063_s28 = sld [smem:[#allocation21_spill]] }
  0x9f   : > { %s343_s1 = sand.u32 1, %s3059_s30  }
  0xa0   : > { %p353_p5 = scmp.lt.s32.totalorder %s3060_s13, 1  ;;  %s1475_s18 = sshll.u32 %s343_s1, 7 }
  0xa1   : > { %s2608_s15 = sshll.u32 %s3061_s2, 7  ;;  %s2618_s4 = scalar_lea.vmem [#allocation11], %s1475_s18 }
  0xa2   : > { %s3116_s13 = smov (!%p353_p5, %s3060_s13), 1 }
  0xa3   : > { %s2616_s16 = scalar_lea.vmem %s3062_s10, %s3116_s13  ;;  %p1477_p7 = scmp.ne.s32.totalorder %s3063_s28, 0 }
  0xa4   : > { %s3064_s24 = sld [smem:[#allocation22_spill]] (!%p1477_p7)  ;;  %s2629_s30 = scalar_lea.vmem (!%p1477_p7), [#allocation4], %s2608_s15 }
  0xa5   : > { %364 = sbr.rel (%p1477_p7) target bundleno = 413 (0x19d), region = 52 }
  0xaa   : > { %v1908_v0 = vld [vmem:[%s2597_s22 + $0x38] sm:$0xff]   ;;  %v1909_v1 = vld [vmem:[%s2597_s22 + $0x30] sm:$0xff]   ;;  %v1910_v2 = vld [vmem:[%s2597_s22 + $0x28] sm:$0xff]   ;;  %p365_p4 = scmp.eq.s32.totalorder %s3064_s24, 0 }
  0xab   : > { %1627 = vmatprep.subr.bf16.mxu0 %v1908_v0  ;;  %1691 = vmatprep.subr.bf16.mxu1 %v1908_v0  ;;  %v1911_v3 = vld [vmem:[%s2597_s22 + $0x20] sm:$0xff]   ;;  %v367_v5 = vld [vmem:[%s2582_s29 + $0x8] sm:$0xff]  ;;  %v1912_v14 = vld [vmem:[%s2597_s22 + $0x18] sm:$0xff]  }
  0xac   : > { %1628 = vmatpush3.bf16.msra.mxu0 %v1908_v0  ;;  %1699 = vmatpush3.bf16.msra.mxu1 %v1908_v0  ;;  %v366_v4 = vld [vmem:[%s2582_s29] sm:$0xff]  ;;  %s399_s3 = scalar_select %p365_p4, 1, 0  ;;  %v384_v7 = vld [vmem:[%s2629_s30 + $0x8] sm:$0xff]  ;;  %v1913_v21 = vld [vmem:[%s2597_s22 + $0x10] sm:$0xff]  }
  0xad   : > { %1629 = vmatprep.subr.bf16.mxu0 %v1909_v1  ;;  %1692 = vmatprep.subr.bf16.mxu1 %v1909_v1  ;;  %v383_v6 = vld [vmem:[%s2629_s30] sm:$0xff]  ;;  %v375_v10 = vld [vmem:[%s2582_s29 + $0x48] sm:$0xff]  ;;  %v368_v23 = vld [vmem:[%s2582_s29 + $0x10] sm:$0xff] }
  0xae   : > { %v374_v8 = vld [vmem:[%s2582_s29 + $0x40] sm:$0xff]  ;;  %v400_v9 = vstv %s399_s3  ;;  %v392_v12 = vld [vmem:[%s2629_s30 + $0x48] sm:$0xff]  ;;  %v369_v24 = vld [vmem:[%s2582_s29 + $0x18] sm:$0xff] }
  0xaf   : > { %v391_v11 = vld [vmem:[%s2629_s30 + $0x40] sm:$0xff]  ;;  %vm2637_vm0 = vcmp.eq.s32.totalorder %v400_v9, 1  ;;  %v1914_v22 = vld [vmem:[%s2597_s22 + $0x8] sm:$0xff]   ;;  %v385_v25 = vld [vmem:[%s2629_s30 + $0x10] sm:$0xff] }
  0xb0   : > { %1630 = vmatpush3.bf16.msra.mxu0 %v1909_v1  ;;  %1700 = vmatpush3.bf16.msra.mxu1 %v1909_v1  ;;  %v402_v15 = vsel %vm2637_vm0, %v366_v4, %v383_v6  ;;  %v403_v16 = vsel %vm2637_vm0, %v367_v5, %v384_v7  ;;  %v410_v17 = vsel %vm2637_vm0, %v374_v8, %v391_v11  ;;  %v386_v26 = vld [vmem:[%s2629_s30 + $0x18] sm:$0xff]  ;;  %v1915_v27 = vld [vmem:[%s2597_s22] sm:$0xff]   ;;  %v376_v28 = vld [vmem:[%s2582_s29 + $0x50] sm:$0xff] }
  0xb1   : > { %1631 = vmatprep.subr.bf16.mxu0 %v1910_v2  ;;  %1693 = vmatprep.subr.bf16.mxu1 %v1910_v2  ;;  %v418_v18 = vpack.c.bf16 %v403_v16, %v402_v15  ;;  %v411_v19 = vsel %vm2637_vm0, %v375_v10, %v392_v12  ;;  %v377_v29 = vld [vmem:[%s2582_s29 + $0x58] sm:$0xff]  ;;  %v393_v30 = vld [vmem:[%s2629_s30 + $0x50] sm:$0xff]  ;;  %v370_v32 = vld [vmem:[%s2582_s29 + $0x20] sm:$0xff]  ;;  %v404_v40 = vsel %vm2637_vm0, %v368_v23, %v385_v25 }
  0xb2   : > { %v422_v20 = vpack.c.bf16 %v411_v19, %v410_v17  ;;  %v394_v31 = vld [vmem:[%s2629_s30 + $0x58] sm:$0xff]  ;;  %v371_v33 = vld [vmem:[%s2582_s29 + $0x28] sm:$0xff]  ;;  %v387_v34 = vld [vmem:[%s2629_s30 + $0x20] sm:$0xff]  ;;  %v405_v41 = vsel %vm2637_vm0, %v369_v24, %v386_v26  ;;  %v412_v42 = vsel %vm2637_vm0, %v376_v28, %v393_v30 }
  0xb3   : > { %1643 = vmatprep.mubr.bf16.mxu0 %v418_v18  ;;  %v388_v35 = vld [vmem:[%s2629_s30 + $0x28] sm:$0xff]  ;;  %v378_v36 = vld [vmem:[%s2582_s29 + $0x60] sm:$0xff]  ;;  %v413_v43 = vsel %vm2637_vm0, %v377_v29, %v394_v31  ;;  %v406_v44 = vsel %vm2637_vm0, %v370_v32, %v387_v34  ;;  %v419_v48 = vpack.c.bf16 %v405_v41, %v404_v40  ;;  %v372_v50 = vld [vmem:[%s2582_s29 + $0x30] sm:$0xff] }
  0xb4   : > { %1632 = vmatpush3.bf16.msra.mxu0 %v1910_v2  ;;  %1701 = vmatpush3.bf16.msra.mxu1 %v1910_v2  ;;  %v379_v37 = vld [vmem:[%s2582_s29 + $0x68] sm:$0xff]  ;;  %v395_v38 = vld [vmem:[%s2629_s30 + $0x60] sm:$0xff]  ;;  %v407_v45 = vsel %vm2637_vm0, %v371_v33, %v388_v35  ;;  %v423_v49 = vpack.c.bf16 %v413_v43, %v412_v42  ;;  %v373_v51 = vld [vmem:[%s2582_s29 + $0x38] sm:$0xff] }
  0xb5   : > { %1633 = vmatprep.subr.bf16.mxu0 %v1911_v3  ;;  %1694 = vmatprep.subr.bf16.mxu1 %v1911_v3  ;;  %v396_v39 = vld [vmem:[%s2629_s30 + $0x68] sm:$0xff]  ;;  %v414_v46 = vsel %vm2637_vm0, %v378_v36, %v395_v38  ;;  %v420_v52 = vpack.c.bf16 %v407_v45, %v406_v44  ;;  %v389_v54 = vld [vmem:[%s2629_s30 + $0x30] sm:$0xff]  ;;  %v390_v55 = vld [vmem:[%s2629_s30 + $0x38] sm:$0xff] }
  0xb6   : > { %1651 = vmatprep.mubr.bf16.mxu1 %v422_v20  ;;  %v415_v47 = vsel %vm2637_vm0, %v379_v37, %v396_v39  ;;  %v380_v56 = vld [vmem:[%s2582_s29 + $0x70] sm:$0xff]  ;;  %v381_v57 = vld [vmem:[%s2582_s29 + $0x78] sm:$0xff]  ;;  %v408_v60 = vsel %vm2637_vm0, %v372_v50, %v389_v54  ;;  %v409_v61 = vsel %vm2637_vm0, %v373_v51, %v390_v55  ;;  %s651_s29 = sshra.s32 %s2608_s15, 3 }
  0xb7   : > { %v424_v53 = vpack.c.bf16 %v415_v47, %v414_v46  ;;  %v397_v58 = vld [vmem:[%s2629_s30 + $0x70] sm:$0xff]  ;;  %v398_v59 = vld [vmem:[%s2629_s30 + $0x78] sm:$0xff]  ;;  %v421_v0 = vpack.c.bf16 %v409_v61, %v408_v60  ;;  %s1502_s22 = sshll.u32 %s651_s29, 2 }
  0xb8   : > { %1634 = vmatpush3.bf16.msra.mxu0 %v1911_v3  ;;  %1702 = vmatpush3.bf16.msra.mxu1 %v1911_v3  ;;  %v416_v62 = vsel %vm2637_vm0, %v380_v56, %v397_v58  ;;  %v417_v63 = vsel %vm2637_vm0, %v381_v57, %v398_v59  ;;  %s654_s13 = scalar_lea.vmem [#allocation3], %s1502_s22 }
  0xb9   : > { %1635 = vmatprep.subr.bf16.mxu0 %v1912_v14  ;;  %1695 = vmatprep.subr.bf16.mxu1 %v1912_v14  ;;  %v425_v1 = vpack.c.bf16 %v417_v63, %v416_v62 }
  0xbc   : > { %1636 = vmatpush3.bf16.msra.mxu0 %v1912_v14  ;;  %1703 = vmatpush3.bf16.msra.mxu1 %v1912_v14 }
  0xbd   : > { %1637 = vmatprep.subr.bf16.mxu0 %v1913_v21  ;;  %1696 = vmatprep.subr.bf16.mxu1 %v1913_v21 }
  0xc0   : > { %1638 = vmatpush3.bf16.msra.mxu0 %v1913_v21  ;;  %1704 = vmatpush3.bf16.msra.mxu1 %v1913_v21 }
  0xc1   : > { %1639 = vmatprep.subr.bf16.mxu0 %v1914_v22  ;;  %1697 = vmatprep.subr.bf16.mxu1 %v1914_v22 }
  0xc4   : > { %1640 = vmatpush3.bf16.msra.mxu0 %v1914_v22  ;;  %1705 = vmatpush3.bf16.msra.mxu1 %v1914_v22 }
  0xc5   : > { %1641 = vmatprep.subr.bf16.mxu0 %v1915_v27  ;;  %1698 = vmatprep.subr.bf16.mxu1 %v1915_v27 }
  0xc8   : > { %1642 = vmatpush3.bf16.msra.mxu0 %v1915_v27  ;;  %1706 = vmatpush3.bf16.msra.mxu1 %v1915_v27 }
  0xcb   : > { %1644 = vmatmul.mubr.bf16.vlgmr.msra.gmra.mxu0 %v419_v48  ;;  %1652 = vmatmul.mubr.bf16.vlgmr.msra.gmra.mxu1 %v423_v49 }
  0xcc   : > { %1647 = vmatprep.mubr.bf16.mxu0 %v420_v52  ;;  %1655 = vmatprep.mubr.bf16.mxu1 %v424_v53 }
  0xd3   : > { %1648 = vmatmul.mubr.bf16.gmra.mxu0 %v421_v0  ;;  %1656 = vmatmul.mubr.bf16.gmra.mxu1 %v425_v1 }
 0x18b   : > { %v1645_v2 = vpop.f32.mrf.mxu0  ;;  %v1653_v3 = vpop.f32.mrf.mxu1 }
 0x18d   : > { %v524_v4 = vpop.f32.mrf.mxu0  ;;  %v556_v5 = vpop.f32.mrf.mxu1 }
 0x18f   : > { %v1646_v6 = vpop.f32.mrf.mxu0  ;;  %v1654_v7 = vpop.f32.mrf.mxu1 }
 0x190   : > { %v1556_v8 = vpack.c.bf16 %v1646_v6, %v1645_v2  ;;  %v1576_v9 = vpack.c.bf16 %v1654_v7, %v1653_v3 }
 0x191   : > { %v527_v10 = vpop.f32.mrf.mxu0  ;;  %v559_v11 = vpop.f32.mrf.mxu1 }
 0x192   : > { %1588 = vst [vmem:[%s654_s13 + $0x8] sm:$0xff] %v1556_v8   ;;  %1592 = vst [vmem:[%s654_s13 + $0x28] sm:$0xff] %v1576_v9   ;;  %v1551_v12 = vpack.c.bf16 %v527_v10, %v524_v4  ;;  %v1571_v13 = vpack.c.bf16 %v559_v11, %v556_v5 }
 0x193   : > { %v1649_v14 = vpop.f32.mrf.mxu0  ;;  %v1657_v15 = vpop.f32.mrf.mxu1 }
 0x194   : > { %1552 = vst [vmem:[%s654_s13] sm:$0xff] %v1551_v12   ;;  %1591 = vst [vmem:[%s654_s13 + $0x20] sm:$0xff] %v1571_v13  }
 0x195   : > { %v540_v16 = vpop.f32.mrf.mxu0  ;;  %v572_v17 = vpop.f32.mrf.mxu1 }
 0x197   : > { %v1650_v18 = vpop.f32.mrf.mxu0  ;;  %v1658_v19 = vpop.f32.mrf.mxu1 }
 0x198   : > { %v1566_v20 = vpack.c.bf16 %v1650_v18, %v1649_v14  ;;  %v1586_v21 = vpack.c.bf16 %v1658_v19, %v1657_v15 }
 0x199   : > { %v543_v22 = vpop.f32.mrf.mxu0  ;;  %v575_v23 = vpop.f32.mrf.mxu1 }
 0x19a   : > { %1590 = vst [vmem:[%s654_s13 + $0x18] sm:$0xff] %v1566_v20   ;;  %1594 = vst [vmem:[%s654_s13 + $0x38] sm:$0xff] %v1586_v21   ;;  %v1561_v24 = vpack.c.bf16 %v543_v22, %v540_v16  ;;  %v1581_v25 = vpack.c.bf16 %v575_v23, %v572_v17 }
 0x19c   : > { %1589 = vst [vmem:[%s654_s13 + $0x10] sm:$0xff] %v1561_v24   ;;  %1593 = vst [vmem:[%s654_s13 + $0x30] sm:$0xff] %v1581_v25  }
 0x19d PF: > { %s3067_s2 = sld [smem:[#allocation20_spill]] }
 0x1a3   : > { %p1503_p2 = scmp.ne.s32.totalorder %s3067_s2, 0 }
 0x1a5   : > { %674 = sbr.rel (%p1503_p2) target bundleno = 435 (0x1b3), region = 56 }
 0x1aa   : > { %v2282_v26 = vmov 0.0  }
 0x1ab   : > { %675 = vst [vmem:[#allocation2 + $0x30] sm:$0xff] %v2282_v26  ;;  %676 = vst [vmem:[#allocation2] sm:$0xff] %v2282_v26 }
 0x1ac   : > { %677 = vst [vmem:[#allocation2 + $0x58] sm:$0xff] %v2282_v26  ;;  %678 = vst [vmem:[#allocation2 + $0x18] sm:$0xff] %v2282_v26 }
 0x1ad   : > { %679 = vst [vmem:[#allocation2 + $0x50] sm:$0xff] %v2282_v26  ;;  %680 = vst [vmem:[#allocation2 + $0x68] sm:$0xff] %v2282_v26 }
 0x1ae   : > { %681 = vst [vmem:[#allocation2 + $0x8] sm:$0xff] %v2282_v26  ;;  %682 = vst [vmem:[#allocation2 + $0x48] sm:$0xff] %v2282_v26 }
 0x1af   : > { %683 = vst [vmem:[#allocation2 + $0x40] sm:$0xff] %v2282_v26  ;;  %684 = vst [vmem:[#allocation2 + $0x20] sm:$0xff] %v2282_v26 }
 0x1b0   : > { %685 = vst [vmem:[#allocation2 + $0x10] sm:$0xff] %v2282_v26  ;;  %686 = vst [vmem:[#allocation2 + $0x38] sm:$0xff] %v2282_v26 }
 0x1b1   : > { %687 = vst [vmem:[#allocation2 + $0x60] sm:$0xff] %v2282_v26  ;;  %688 = vst [vmem:[#allocation2 + $0x70] sm:$0xff] %v2282_v26 }
 0x1b2   : > { %689 = vst [vmem:[#allocation2 + $0x78] sm:$0xff] %v2282_v26  ;;  %690 = vst [vmem:[#allocation2 + $0x28] sm:$0xff] %v2282_v26 }
 0x1b3 PF: > { %s723_s18 = sshra.s32 %s2608_s15, 3  ;;  %v1924_v27 = vld [vmem:[%s2590_s21] sm:$0xff]   ;;  %s3068_s15 = sld [smem:[#allocation20_spill]]  ;;  %v1926_v37 = vld [vmem:[%s2590_s21 + $0x8] sm:$0xff]   ;;  %v1928_v39 = vld [vmem:[%s2590_s21 + $0x10] sm:$0xff]  }
 0x1b4   : > { %s1504_s25 = sshll.u32 %s723_s18, 2  ;;  %v1925_v28 = vld [vmem:[%s2590_s21 + $0x20] sm:$0xff]   ;;  %1675 = vmatprep.mubr.bf16.mxu0 %v1924_v27  ;;  %s3069_s10 = sld [smem:[#allocation21_spill]]  ;;  %v1927_v38 = vld [vmem:[%s2590_s21 + $0x28] sm:$0xff]   ;;  %v1929_v40 = vld [vmem:[%s2590_s21 + $0x30] sm:$0xff]  }
 0x1b5   : > { %s2706_s27 = scalar_lea.vmem [#allocation3], %s1504_s25  ;;  %1683 = vmatprep.mubr.bf16.mxu1 %v1925_v28  ;;  %v1930_v41 = vld [vmem:[%s2590_s21 + $0x18] sm:$0xff]   ;;  %v691_v47 = vld [vmem:[#allocation2 + $0x30] sm:$0xff]  ;;  %v692_v59 = vld [vmem:[#allocation2] sm:$0xff] }
 0x1b6   : > { %v1916_v29 = vld [vmem:[%s2706_s27 + $0x38] sm:$0xff]   ;;  %v1917_v30 = vld [vmem:[%s2706_s27 + $0x30] sm:$0xff]   ;;  %v1918_v31 = vld [vmem:[%s2706_s27 + $0x28] sm:$0xff]  }
 0x1b7   : > { %1659 = vmatprep.subr.bf16.mxu0 %v1916_v29  ;;  %1707 = vmatprep.subr.bf16.mxu1 %v1916_v29  ;;  %v1919_v32 = vld [vmem:[%s2706_s27 + $0x20] sm:$0xff]   ;;  %v1920_v33 = vld [vmem:[%s2706_s27 + $0x18] sm:$0xff]   ;;  %v1921_v34 = vld [vmem:[%s2706_s27 + $0x10] sm:$0xff]  }
 0x1b8   : > { %1660 = vmatpush3.bf16.msra.mxu0 %v1916_v29  ;;  %1715 = vmatpush3.bf16.msra.mxu1 %v1916_v29  ;;  %v1922_v35 = vld [vmem:[%s2706_s27 + $0x8] sm:$0xff]   ;;  %v1923_v36 = vld [vmem:[%s2706_s27] sm:$0xff]   ;;  %v1931_v42 = vld [vmem:[%s2590_s21 + $0x38] sm:$0xff]  }
 0x1b9   : > { %1661 = vmatprep.subr.bf16.mxu0 %v1917_v30  ;;  %1708 = vmatprep.subr.bf16.mxu1 %v1917_v30  ;;  %p969_p8 = scmp.eq.s32.totalorder %s3068_s15, 2  ;;  %v693_v43 = vld [vmem:[#allocation2 + $0x58] sm:$0xff]  ;;  %v701_v44 = vld [vmem:[#allocation2 + $0x10] sm:$0xff]  ;;  %v699_v48 = vld [vmem:[#allocation2 + $0x40] sm:$0xff] }
 0x1ba   : > { %s1521_s24 = sshll.u32 %s3069_s10, 7  ;;  %v694_v53 = vld [vmem:[#allocation2 + $0x18] sm:$0xff]  ;;  %v700_v60 = vld [vmem:[#allocation2 + $0x20] sm:$0xff]  ;;  %v697_v1 = vld [vmem:[#allocation2 + $0x8] sm:$0xff] }
 0x1bb   : > { %p2728_p6 = pnand %p969_p8, %p353_p5  ;;  %v702_v54 = vld [vmem:[#allocation2 + $0x38] sm:$0xff]  ;;  %v695_v7 = vld [vmem:[#allocation2 + $0x50] sm:$0xff]  ;;  %v703_v8 = vld [vmem:[#allocation2 + $0x60] sm:$0xff] }
 0x1bc   : > { %1662 = vmatpush3.bf16.msra.mxu0 %v1917_v30  ;;  %1716 = vmatpush3.bf16.msra.mxu1 %v1917_v30  ;;  %v705_v2 = vld [vmem:[#allocation2 + $0x78] sm:$0xff]  ;;  %v698_v13 = vld [vmem:[#allocation2 + $0x48] sm:$0xff]  ;;  %v704_v20 = vld [vmem:[#allocation2 + $0x70] sm:$0xff]  ;;  %s2737_s30 = scalar_lea.vmem (!%p2728_p6), [#allocation4], %s1521_s24 }
 0x1bd   : > { %1663 = vmatprep.subr.bf16.mxu0 %v1918_v31  ;;  %1709 = vmatprep.subr.bf16.mxu1 %v1918_v31  ;;  %v706_v14 = vld [vmem:[#allocation2 + $0x28] sm:$0xff] }
 0x1be   : > { %v696_v19 = vld [vmem:[#allocation2 + $0x68] sm:$0xff] }
 0x1c0   : > { %1664 = vmatpush3.bf16.msra.mxu0 %v1918_v31  ;;  %1717 = vmatpush3.bf16.msra.mxu1 %v1918_v31 }
 0x1c1   : > { %1665 = vmatprep.subr.bf16.mxu0 %v1919_v32  ;;  %1710 = vmatprep.subr.bf16.mxu1 %v1919_v32 }
 0x1c4   : > { %1666 = vmatpush3.bf16.msra.mxu0 %v1919_v32  ;;  %1718 = vmatpush3.bf16.msra.mxu1 %v1919_v32 }
 0x1c5   : > { %1667 = vmatprep.subr.bf16.mxu0 %v1920_v33  ;;  %1711 = vmatprep.subr.bf16.mxu1 %v1920_v33 }
 0x1c8   : > { %1668 = vmatpush3.bf16.msra.mxu0 %v1920_v33  ;;  %1719 = vmatpush3.bf16.msra.mxu1 %v1920_v33 }
 0x1c9   : > { %1669 = vmatprep.subr.bf16.mxu0 %v1921_v34  ;;  %1712 = vmatprep.subr.bf16.mxu1 %v1921_v34 }
 0x1cc   : > { %1670 = vmatpush3.bf16.msra.mxu0 %v1921_v34  ;;  %1720 = vmatpush3.bf16.msra.mxu1 %v1921_v34 }
 0x1cd   : > { %1671 = vmatprep.subr.bf16.mxu0 %v1922_v35  ;;  %1713 = vmatprep.subr.bf16.mxu1 %v1922_v35 }
 0x1d0   : > { %1672 = vmatpush3.bf16.msra.mxu0 %v1922_v35  ;;  %1721 = vmatpush3.bf16.msra.mxu1 %v1922_v35 }
 0x1d1   : > { %1673 = vmatprep.subr.bf16.mxu0 %v1923_v36  ;;  %1714 = vmatprep.subr.bf16.mxu1 %v1923_v36 }
 0x1d4   : > { %1674 = vmatpush3.bf16.msra.mxu0 %v1923_v36  ;;  %1722 = vmatpush3.bf16.msra.mxu1 %v1923_v36 }
 0x1d7   : > { %1676 = vmatmul.mubr.bf16.vlgmr.msra.gmra.mxu0 %v1926_v37  ;;  %1684 = vmatmul.mubr.bf16.vlgmr.msra.gmra.mxu1 %v1927_v38 }
 0x1d8   : > { %1679 = vmatprep.mubr.bf16.mxu0 %v1928_v39  ;;  %1687 = vmatprep.mubr.bf16.mxu1 %v1929_v40 }
 0x1df   : > { %1680 = vmatmul.mubr.bf16.gmra.mxu0 %v1930_v41  ;;  %1688 = vmatmul.mubr.bf16.gmra.mxu1 %v1931_v42 }
 0x297   : > { %v1677_v45 = vpop.f32.mrf.mxu0  ;;  %v1685_v46 = vpop.f32.mrf.mxu1 }
 0x298   : > { %v938_v49 = vadd.f32 %v1677_v45, %v693_v43  ;;  %v946_v50 = vadd.f32 %v1685_v46, %v701_v44 }
 0x299   : > { %v873_v51 = vpop.f32.mrf.mxu0  ;;  %v905_v52 = vpop.f32.mrf.mxu1 }
 0x29a   : > { %954 = vst [vmem:[#allocation2 + $0x58] sm:$0xff] %v938_v49  ;;  %962 = vst [vmem:[#allocation2 + $0x10] sm:$0xff] %v946_v50  ;;  %v936_v55 = vadd.f32 %v873_v51, %v691_v47  ;;  %v944_v56 = vadd.f32 %v905_v52, %v699_v48 }
 0x29b   : > { %v1678_v57 = vpop.f32.mrf.mxu0  ;;  %v1686_v58 = vpop.f32.mrf.mxu1 }
 0x29c   : > { %952 = vst [vmem:[#allocation2 + $0x30] sm:$0xff] %v936_v55  ;;  %960 = vst [vmem:[#allocation2 + $0x40] sm:$0xff] %v944_v56  ;;  %v939_v61 = vadd.f32 %v1678_v57, %v694_v53  ;;  %v947_v62 = vadd.f32 %v1686_v58, %v702_v54 }
 0x29d   : > { %v876_v63 = vpop.f32.mrf.mxu0  ;;  %v908_v0 = vpop.f32.mrf.mxu1 }
 0x29e   : > { %955 = vst [vmem:[#allocation2 + $0x18] sm:$0xff] %v939_v61  ;;  %963 = vst [vmem:[#allocation2 + $0x38] sm:$0xff] %v947_v62  ;;  %v937_v3 = vadd.f32 %v876_v63, %v692_v59  ;;  %v945_v4 = vadd.f32 %v908_v0, %v700_v60 }
 0x29f   : > { %v1681_v5 = vpop.f32.mrf.mxu0  ;;  %v1689_v6 = vpop.f32.mrf.mxu1 }
 0x2a0   : > { %953 = vst [vmem:[#allocation2] sm:$0xff] %v937_v3  ;;  %961 = vst [vmem:[#allocation2 + $0x20] sm:$0xff] %v945_v4  ;;  %v942_v9 = vadd.f32 %v1681_v5, %v697_v1  ;;  %v950_v10 = vadd.f32 %v1689_v6, %v705_v2 }
 0x2a1   : > { %v889_v11 = vpop.f32.mrf.mxu0  ;;  %v921_v12 = vpop.f32.mrf.mxu1 }
 0x2a2   : > { %958 = vst [vmem:[#allocation2 + $0x8] sm:$0xff] %v942_v9  ;;  %966 = vst [vmem:[#allocation2 + $0x78] sm:$0xff] %v950_v10  ;;  %v940_v15 = vadd.f32 %v889_v11, %v695_v7  ;;  %v948_v16 = vadd.f32 %v921_v12, %v703_v8 }
 0x2a3   : > { %v1682_v17 = vpop.f32.mrf.mxu0  ;;  %v1690_v18 = vpop.f32.mrf.mxu1 }
 0x2a4   : > { %956 = vst [vmem:[#allocation2 + $0x50] sm:$0xff] %v940_v15  ;;  %964 = vst [vmem:[#allocation2 + $0x60] sm:$0xff] %v948_v16  ;;  %v943_v21 = vadd.f32 %v1682_v17, %v698_v13  ;;  %v951_v22 = vadd.f32 %v1690_v18, %v706_v14  ;;  %974 = sbr.rel (%p2728_p6) target bundleno = 694 (0x2b6), region = 60 }
 0x2a5   : > { %v892_v23 = vpop.f32.mrf.mxu0  ;;  %v924_v24 = vpop.f32.mrf.mxu1 }
 0x2a6   : > { %959 = vst [vmem:[#allocation2 + $0x48] sm:$0xff] %v943_v21  ;;  %967 = vst [vmem:[#allocation2 + $0x28] sm:$0xff] %v951_v22  ;;  %v941_v25 = vadd.f32 %v892_v23, %v696_v19  ;;  %v949_v26 = vadd.f32 %v924_v24, %v704_v20 }
 0x2a8   : > { %957 = vst [vmem:[#allocation2 + $0x68] sm:$0xff] %v941_v25  ;;  %965 = vst [vmem:[#allocation2 + $0x70] sm:$0xff] %v949_v26 }
 0x2a9   : > { %v975_v27 = vld [vmem:[#allocation2 + $0x30] sm:$0xff]  ;;  %v1522_v28 = vld [vmem:[%s2616_s16] ss:$0 sm:$0xff]  ;;  %v977_v32 = vld [vmem:[#allocation2 + $0x58] sm:$0xff] }
 0x2aa   : > { %v976_v29 = vld [vmem:[#allocation2] sm:$0xff]  ;;  %v998_v30 = vadd.f32 %v1522_v28, %v975_v27  ;;  %v978_v33 = vld [vmem:[#allocation2 + $0x18] sm:$0xff]  ;;  %v1000_v35 = vadd.f32 %v1522_v28, %v977_v32  ;;  %v981_v39 = vld [vmem:[#allocation2 + $0x8] sm:$0xff] }
 0x2ab   : > { %v999_v31 = vadd.f32 %v1522_v28, %v976_v29  ;;  %v979_v34 = vld [vmem:[#allocation2 + $0x50] sm:$0xff]  ;;  %v1001_v36 = vadd.f32 %v1522_v28, %v978_v33  ;;  %v1004_v44 = vadd.f32 %v1522_v28, %v981_v39  ;;  %v983_v45 = vld [vmem:[#allocation2 + $0x40] sm:$0xff]  ;;  %v986_v52 = vld [vmem:[#allocation2 + $0x38] sm:$0xff] }
 0x2ac   : > { %v1002_v37 = vadd.f32 %v1522_v28, %v979_v34  ;;  %v1014_v41 = vmax.f32 %v998_v30, 0.0  ;;  %v984_v46 = vld [vmem:[#allocation2 + $0x20] sm:$0xff]  ;;  %v985_v47 = vld [vmem:[#allocation2 + $0x10] sm:$0xff]  ;;  %v1016_v48 = vmax.f32 %v1000_v35, 0.0  ;;  %v1006_v57 = vadd.f32 %v1522_v28, %v983_v45  ;;  %v989_v59 = vld [vmem:[#allocation2 + $0x78] sm:$0xff] }
 0x2ad   : > { %v982_v40 = vld [vmem:[#allocation2 + $0x48] sm:$0xff]  ;;  %v1015_v42 = vmax.f32 %v999_v31, 0.0  ;;  %v1017_v49 = vmax.f32 %v1001_v36, 0.0  ;;  %v987_v53 = vld [vmem:[#allocation2 + $0x60] sm:$0xff]  ;;  %v1020_v56 = vmax.f32 %v1004_v44, 0.0  ;;  %v1007_v58 = vadd.f32 %v1522_v28, %v984_v46 }
 0x2ae   : > { %v1018_v50 = vmax.f32 %v1002_v37, 0.0  ;;  %v1005_v51 = vadd.f32 %v1522_v28, %v982_v40  ;;  %1031 = vst [vmem:[%s2737_s30] sm:$0xff] %v1014_v41  ;;  %v990_v60 = vld [vmem:[#allocation2 + $0x28] sm:$0xff]  ;;  %1033 = vst [vmem:[%s2737_s30 + $0x10] sm:$0xff] %v1016_v48  ;;  %v1008_v62 = vadd.f32 %v1522_v28, %v985_v47  ;;  %v1009_v63 = vadd.f32 %v1522_v28, %v986_v52 }
 0x2af   : > { %v980_v38 = vld [vmem:[#allocation2 + $0x68] sm:$0xff]  ;;  %v988_v54 = vld [vmem:[#allocation2 + $0x70] sm:$0xff]  ;;  %1032 = vst [vmem:[%s2737_s30 + $0x8] sm:$0xff] %v1015_v42  ;;  %1034 = vst [vmem:[%s2737_s30 + $0x18] sm:$0xff] %v1017_v49  ;;  %v1010_v0 = vadd.f32 %v1522_v28, %v987_v53  ;;  %v1022_v1 = vmax.f32 %v1006_v57, 0.0  ;;  %v1023_v2 = vmax.f32 %v1007_v58, 0.0  ;;  %v1012_v4 = vadd.f32 %v1522_v28, %v989_v59 }
 0x2b0   : > { %v1003_v43 = vadd.f32 %v1522_v28, %v980_v38  ;;  %1035 = vst [vmem:[%s2737_s30 + $0x20] sm:$0xff] %v1018_v50  ;;  %v1021_v61 = vmax.f32 %v1005_v51, 0.0  ;;  %1037 = vst [vmem:[%s2737_s30 + $0x30] sm:$0xff] %v1020_v56  ;;  %v1011_v3 = vadd.f32 %v1522_v28, %v988_v54  ;;  %v1024_v5 = vmax.f32 %v1008_v62, 0.0 }
 0x2b1   : > { %v1025_v6 = vmax.f32 %v1009_v63, 0.0  ;;  %v1026_v7 = vmax.f32 %v1010_v0, 0.0  ;;  %v1013_v8 = vadd.f32 %v1522_v28, %v990_v60  ;;  %1039 = vst [vmem:[%s2737_s30 + $0x40] sm:$0xff] %v1022_v1  ;;  %1040 = vst [vmem:[%s2737_s30 + $0x48] sm:$0xff] %v1023_v2  ;;  %v1028_v10 = vmax.f32 %v1012_v4, 0.0 }
 0x2b2   : > { %v1019_v55 = vmax.f32 %v1003_v43, 0.0  ;;  %1038 = vst [vmem:[%s2737_s30 + $0x38] sm:$0xff] %v1021_v61  ;;  %v1027_v9 = vmax.f32 %v1011_v3, 0.0  ;;  %1041 = vst [vmem:[%s2737_s30 + $0x50] sm:$0xff] %v1024_v5 }
 0x2b3   : > { %1042 = vst [vmem:[%s2737_s30 + $0x58] sm:$0xff] %v1025_v6  ;;  %1043 = vst [vmem:[%s2737_s30 + $0x60] sm:$0xff] %v1026_v7  ;;  %v1029_v11 = vmax.f32 %v1013_v8, 0.0 }
 0x2b4   : > { %1036 = vst [vmem:[%s2737_s30 + $0x28] sm:$0xff] %v1019_v55  ;;  %1044 = vst [vmem:[%s2737_s30 + $0x68] sm:$0xff] %v1027_v9 }
 0x2b5   : > { %1045 = vst [vmem:[%s2737_s30 + $0x70] sm:$0xff] %v1028_v10  ;;  %1046 = vst [vmem:[%s2737_s30 + $0x78] sm:$0xff] %v1029_v11 }
 0x2b6 PF: > { %s3073_s29 = sld [smem:[#allocation22_spill]] }
 0x2bc   : > { %p1047_p1 = scmp.eq.s32.totalorder %s3073_s29, 1 }
 0x2be   : > { %p1048_p3 = pnand %p1047_p1, %p969_p8 }
 0x2c0   : > { %1051 = sbr.rel (%p1048_p3) target bundleno = 1060 (0x424), region = 64 }
 0x2c5   : > { %v1052_v12 = vld [vmem:[#allocation2 + $0x30] sm:$0xff]  ;;  %v1523_v13 = vld [vmem:[%s2616_s16] ss:$0 sm:$0xff]  ;;  %v1091_v14 = vlaneseq  ;;  %v1054_v15 = vld [vmem:[#allocation2 + $0x58] sm:$0xff] }
 0x2c6   : > { %v1075_v16 = vadd.f32 %v1523_v13, %v1052_v12  ;;  %v1077_v17 = vadd.f32 %v1523_v13, %v1054_v15  ;;  %v1053_v18 = vld [vmem:[#allocation2] sm:$0xff]  ;;  %v1055_v19 = vld [vmem:[#allocation2 + $0x18] sm:$0xff]  ;;  %v1056_v23 = vld [vmem:[#allocation2 + $0x50] sm:$0xff] }
 0x2c7   : > { %v1092_v20 = vand.u32 127, %v1091_v14  ;;  %v1076_v21 = vadd.f32 %v1523_v13, %v1053_v18  ;;  %v1078_v22 = vadd.f32 %v1523_v13, %v1055_v19  ;;  %v1057_v24 = vld [vmem:[#allocation2 + $0x68] sm:$0xff]  ;;  %v1079_v29 = vadd.f32 %v1523_v13, %v1056_v23  ;;  %v1060_v37 = vld [vmem:[#allocation2 + $0x40] sm:$0xff]  ;;  %v1062_v43 = vld [vmem:[#allocation2 + $0x10] sm:$0xff] }
 0x2c8   : > { %v1080_v30 = vadd.f32 %v1523_v13, %v1057_v24  ;;  %v1058_v31 = vld [vmem:[#allocation2 + $0x8] sm:$0xff]  ;;  %v1061_v38 = vld [vmem:[#allocation2 + $0x20] sm:$0xff]  ;;  %v1083_v41 = vadd.f32 %v1523_v13, %v1060_v37  ;;  %v1063_v44 = vld [vmem:[#allocation2 + $0x38] sm:$0xff]  ;;  %v1085_v47 = vadd.f32 %v1523_v13, %v1062_v43 }
 0x2c9   : > { %vm1093_vm1 = vcmp.lt.s32.totalorder %v1092_v20, 8  ;;  %v1059_v32 = vld [vmem:[#allocation2 + $0x48] sm:$0xff]  ;;  %v1081_v35 = vadd.f32 %v1523_v13, %v1058_v31  ;;  %v1084_v42 = vadd.f32 %v1523_v13, %v1061_v38  ;;  %v1086_v48 = vadd.f32 %v1523_v13, %v1063_v44  ;;  %v1064_v49 = vld [vmem:[#allocation2 + $0x60] sm:$0xff]  ;;  %v1065_v50 = vld [vmem:[#allocation2 + $0x70] sm:$0xff] }
 0x2ca   : > { %v1094_v25 = vsel %vm1093_vm1, %v1075_v16, -inf  ;;  %v1096_v26 = vsel %vm1093_vm1, %v1077_v17, -inf  ;;  %v1095_v27 = vsel %vm1093_vm1, %v1076_v21, -inf  ;;  %v1097_v28 = vsel %vm1093_vm1, %v1078_v22, -inf  ;;  %v1066_v55 = vld [vmem:[#allocation2 + $0x78] sm:$0xff]  ;;  %v1067_v56 = vld [vmem:[#allocation2 + $0x28] sm:$0xff] }
 0x2cb   : > { %1110 = vmax.xlane.f32.xlu0 %v1094_v25  ;;  %1114 = vmax.xlane.f32.xlu1 %v1096_v26  ;;  %v1098_v33 = vsel %vm1093_vm1, %v1079_v29, -inf  ;;  %v1099_v34 = vsel %vm1093_vm1, %v1080_v30, -inf  ;;  %v1082_v36 = vadd.f32 %v1523_v13, %v1059_v32  ;;  %v1100_v39 = vsel %vm1093_vm1, %v1081_v35, -inf }
 0x2cc   : > { %v1102_v45 = vsel %vm1093_vm1, %v1083_v41, -inf  ;;  %v1103_v46 = vsel %vm1093_vm1, %v1084_v42, -inf  ;;  %v1104_v51 = vsel %vm1093_vm1, %v1085_v47, -inf  ;;  %v1105_v52 = vsel %vm1093_vm1, %v1086_v48, -inf }
 0x2cd   : > { %v1101_v40 = vsel %vm1093_vm1, %v1082_v36, -inf  ;;  %v1087_v53 = vadd.f32 %v1523_v13, %v1064_v49  ;;  %v1088_v54 = vadd.f32 %v1523_v13, %v1065_v50  ;;  %v1089_v59 = vadd.f32 %v1523_v13, %v1066_v55 }
 0x2ce   : > { %v1090_v60 = vadd.f32 %v1523_v13, %v1067_v56 }
 0x2cf   : > { %1112 = vmax.xlane.f32.xlu0 %v1095_v27  ;;  %1116 = vmax.xlane.f32.xlu1 %v1097_v28  ;;  %v2774_v57 = vsel %vm1093_vm1, %v1087_v53, -inf  ;;  %v2777_v58 = vsel %vm1093_vm1, %v1088_v54, -inf  ;;  %v2782_v61 = vsel %vm1093_vm1, %v1089_v59, -inf }
 0x2d0   : > { %v2785_v62 = vsel %vm1093_vm1, %v1090_v60, -inf }
 0x2d3   : > { %1118 = vmax.xlane.f32.xlu0 %v1098_v33  ;;  %1120 = vmax.xlane.f32.xlu1 %v1099_v34 }
 0x2d7   : > { %1122 = vmax.xlane.f32.xlu0 %v1100_v39  ;;  %1124 = vmax.xlane.f32.xlu1 %v1101_v40 }
 0x2db   : > { %1126 = vmax.xlane.f32.xlu0 %v1102_v45  ;;  %1128 = vmax.xlane.f32.xlu1 %v1103_v46 }
 0x2df   : > { %1130 = vmax.xlane.f32.xlu0 %v1104_v51  ;;  %1132 = vmax.xlane.f32.xlu1 %v1105_v52 }
 0x2e3   : > { %1134 = vmax.xlane.f32.xlu0 %v2774_v57  ;;  %1136 = vmax.xlane.f32.xlu1 %v2777_v58 }
 0x2e7   : > { %1138 = vmax.xlane.f32.xlu0 %v2782_v61  ;;  %1140 = vmax.xlane.f32.xlu1 %v2785_v62 }
 0x354   : > { %v1111_v63 = vpop.xlane.xlu0 %1110  ;;  %v1115_v0 = vpop.xlane.xlu1 %1114 }
 0x355   : > { %v2789_v1 = vsub.f32 %v1094_v25, %v1111_v63  ;;  %v2791_v2 = vsub.f32 %v1096_v26, %v1115_v0 }
 0x357   : > { %v1158_v3 = vmul.f32 1.442695, %v2789_v1  ;;  %v1162_v4 = vmul.f32 1.442695, %v2791_v2 }
 0x358   : > { %v1113_v5 = vpop.xlane.xlu0 %1112  ;;  %v1117_v6 = vpop.xlane.xlu1 %1116 }
 0x359   : > { %1932 = vpow2.f32 %v1158_v3  ;;  %v2795_v7 = vsub.f32 %v1095_v27, %v1113_v5  ;;  %v2797_v8 = vsub.f32 %v1097_v28, %v1117_v6 }
 0x35a   : > { %1934 = vpow2.f32 %v1162_v4 }
 0x35b   : > { %v1160_v9 = vmul.f32 1.442695, %v2795_v7  ;;  %v1164_v10 = vmul.f32 1.442695, %v2797_v8 }
 0x35c   : > { %v1119_v11 = vpop.xlane.xlu0 %1118  ;;  %v1121_v12 = vpop.xlane.xlu1 %1120 }
 0x35d   : > { %1936 = vpow2.f32 %v1160_v9  ;;  %v2801_v13 = vsub.f32 %v1098_v33, %v1119_v11  ;;  %v2803_v14 = vsub.f32 %v1099_v34, %v1121_v12 }
 0x35e   : > { %1938 = vpow2.f32 %v1164_v10 }
 0x35f   : > { %v1166_v15 = vmul.f32 1.442695, %v2801_v13  ;;  %v1168_v16 = vmul.f32 1.442695, %v2803_v14 }
 0x360   : > { %v1123_v17 = vpop.xlane.xlu0 %1122  ;;  %v1125_v18 = vpop.xlane.xlu1 %1124 }
 0x361   : > { %1940 = vpow2.f32 %v1166_v15  ;;  %v2807_v19 = vsub.f32 %v1100_v39, %v1123_v17  ;;  %v2809_v20 = vsub.f32 %v1101_v40, %v1125_v18 }
 0x362   : > { %1942 = vpow2.f32 %v1168_v16 }
 0x363   : > { %v1170_v21 = vmul.f32 1.442695, %v2807_v19  ;;  %v1172_v22 = vmul.f32 1.442695, %v2809_v20 }
 0x364   : > { %v1127_v23 = vpop.xlane.xlu0 %1126  ;;  %v1129_v24 = vpop.xlane.xlu1 %1128 }
 0x365   : > { %1944 = vpow2.f32 %v1170_v21  ;;  %v2813_v25 = vsub.f32 %v1102_v45, %v1127_v23  ;;  %v2815_v26 = vsub.f32 %v1103_v46, %v1129_v24 }
 0x366   : > { %v1933_v27 = vpop.eup %1932  ;;  %1946 = vpow2.f32 %v1172_v22 }
 0x367   : > { %v1174_v28 = vmul.f32 1.442695, %v2813_v25  ;;  %1190 = vadd.xlane.f32.xlu0 %v1933_v27  ;;  %v1176_v29 = vmul.f32 1.442695, %v2815_v26  ;;  %v1935_v30 = vpop.eup %1934 }
 0x368   : > { %v1131_v31 = vpop.xlane.xlu0 %1130  ;;  %v1133_v32 = vpop.xlane.xlu1 %1132 }
 0x369   : > { %1948 = vpow2.f32 %v1174_v28  ;;  %v2819_v33 = vsub.f32 %v1104_v51, %v1131_v31  ;;  %v2821_v34 = vsub.f32 %v1105_v52, %v1133_v32 }
 0x36a   : > { %v1937_v35 = vpop.eup %1936  ;;  %1950 = vpow2.f32 %v1176_v29 }
 0x36b   : > { %v1178_v36 = vmul.f32 1.442695, %v2819_v33  ;;  %1194 = vadd.xlane.f32.xlu0 %v1935_v30  ;;  %1192 = vadd.xlane.f32.xlu1 %v1937_v35  ;;  %v1180_v37 = vmul.f32 1.442695, %v2821_v34  ;;  %v1939_v38 = vpop.eup %1938 }
 0x36c   : > { %v1135_v39 = vpop.xlane.xlu0 %1134  ;;  %v1137_v40 = vpop.xlane.xlu1 %1136 }
 0x36d   : > { %1952 = vpow2.f32 %v1178_v36  ;;  %v2826_v41 = vsub.f32 %v2774_v57, %v1135_v39  ;;  %v2829_v42 = vsub.f32 %v2777_v58, %v1137_v40 }
 0x36e   : > { %v1941_v43 = vpop.eup %1940  ;;  %1954 = vpow2.f32 %v1180_v37 }
 0x36f   : > { %v1182_v44 = vmul.f32 1.442695, %v2826_v41  ;;  %1196 = vadd.xlane.f32.xlu1 %v1939_v38  ;;  %1198 = vadd.xlane.f32.xlu0 %v1941_v43  ;;  %v1184_v45 = vmul.f32 1.442695, %v2829_v42  ;;  %v1943_v46 = vpop.eup %1942 }
 0x370   : > { %v1139_v47 = vpop.xlane.xlu0 %1138  ;;  %v1141_v48 = vpop.xlane.xlu1 %1140 }
 0x371   : > { %1956 = vpow2.f32 %v1182_v44  ;;  %v2834_v49 = vsub.f32 %v2782_v61, %v1139_v47  ;;  %v2837_v50 = vsub.f32 %v2785_v62, %v1141_v48 }
 0x372   : > { %v1945_v51 = vpop.eup %1944  ;;  %1958 = vpow2.f32 %v1184_v45 }
 0x373   : > { %v1186_v52 = vmul.f32 1.442695, %v2834_v49  ;;  %1200 = vadd.xlane.f32.xlu1 %v1943_v46  ;;  %1202 = vadd.xlane.f32.xlu0 %v1945_v51  ;;  %v1188_v53 = vmul.f32 1.442695, %v2837_v50  ;;  %v1947_v54 = vpop.eup %1946 }
 0x375   : > { %1960 = vpow2.f32 %v1186_v52 }
 0x376   : > { %v1949_v55 = vpop.eup %1948  ;;  %1962 = vpow2.f32 %v1188_v53 }
 0x377   : > { %1204 = vadd.xlane.f32.xlu1 %v1947_v54  ;;  %1206 = vadd.xlane.f32.xlu0 %v1949_v55  ;;  %v1951_v56 = vpop.eup %1950 }
 0x37a   : > { %v1953_v57 = vpop.eup %1952 }
 0x37b   : > { %1208 = vadd.xlane.f32.xlu1 %v1951_v56  ;;  %1210 = vadd.xlane.f32.xlu0 %v1953_v57  ;;  %v1955_v58 = vpop.eup %1954 }
 0x37e   : > { %v1957_v59 = vpop.eup %1956 }
 0x37f   : > { %1212 = vadd.xlane.f32.xlu1 %v1955_v58  ;;  %1214 = vadd.xlane.f32.xlu0 %v1957_v59  ;;  %v1959_v60 = vpop.eup %1958 }
 0x382   : > { %v1961_v61 = vpop.eup %1960 }
 0x383   : > { %1216 = vadd.xlane.f32.xlu1 %v1959_v60  ;;  %1218 = vadd.xlane.f32.xlu0 %v1961_v61  ;;  %v1963_v62 = vpop.eup %1962 }
 0x387   : > { %1220 = vadd.xlane.f32.xlu1 %v1963_v62 }
 0x3f0   : > { %v1191_v63 = vpop.xlane.xlu0 %1190 }
 0x3f1   : > { %1964 = vlog2.f32 %v1191_v63 }
 0x3f4   : > { %v1193_v0 = vpop.xlane.xlu1 %1192  ;;  %v1195_v3 = vpop.xlane.xlu0 %1194 }
 0x3f5   : > { %1966 = vlog2.f32 %v1193_v0 }
 0x3f6   : > { %1968 = vlog2.f32 %v1195_v3 }
 0x3f8   : > { %v1197_v4 = vpop.xlane.xlu1 %1196  ;;  %v1199_v5 = vpop.xlane.xlu0 %1198 }
 0x3f9   : > { %1970 = vlog2.f32 %v1197_v4 }
 0x3fa   : > { %1972 = vlog2.f32 %v1199_v5 }
 0x3fc   : > { %v1201_v6 = vpop.xlane.xlu1 %1200  ;;  %v1203_v9 = vpop.xlane.xlu0 %1202 }
 0x3fd   : > { %1974 = vlog2.f32 %v1201_v6 }
 0x3fe   : > { %v1965_v10 = vpop.eup %1964  ;;  %1976 = vlog2.f32 %v1203_v9 }
 0x3ff   : > { %v1223_v11 = vmul.f32 0.6931472, %v1965_v10 }
 0x400   : > { %v1205_v12 = vpop.xlane.xlu1 %1204  ;;  %v1207_v15 = vpop.xlane.xlu0 %1206 }
 0x401   : > { %v1254_v16 = vsub.f32 %v2789_v1, %v1223_v11  ;;  %1978 = vlog2.f32 %v1205_v12 }
 0x402   : > { %v1967_v17 = vpop.eup %1966  ;;  %1980 = vlog2.f32 %v1207_v15 }
 0x403   : > { %v1969_v18 = vpop.eup %1968  ;;  %1270 = vst [vmem:[%s2618_s4] sm:$0xff] %v1254_v16  ;;  %v1225_v21 = vmul.f32 0.6931472, %v1967_v17 }
 0x404   : > { %v1227_v22 = vmul.f32 0.6931472, %v1969_v18  ;;  %v1209_v23 = vpop.xlane.xlu1 %1208  ;;  %v1211_v24 = vpop.xlane.xlu0 %1210 }
 0x405   : > { %v1255_v27 = vsub.f32 %v2795_v7, %v1225_v21  ;;  %1982 = vlog2.f32 %v1209_v23 }
 0x406   : > { %v1971_v28 = vpop.eup %1970  ;;  %v1256_v29 = vsub.f32 %v2791_v2, %v1227_v22  ;;  %1984 = vlog2.f32 %v1211_v24 }
 0x407   : > { %v1973_v1 = vpop.eup %1972  ;;  %1271 = vst [vmem:[%s2618_s4 + $0x8] sm:$0xff] %v1255_v27  ;;  %v1229_v30 = vmul.f32 0.6931472, %v1971_v28 }
 0x408   : > { %1272 = vst [vmem:[%s2618_s4 + $0x10] sm:$0xff] %v1256_v29  ;;  %v1231_v31 = vmul.f32 0.6931472, %v1973_v1  ;;  %v1213_v32 = vpop.xlane.xlu1 %1212  ;;  %v1215_v35 = vpop.xlane.xlu0 %1214 }
 0x409   : > { %v1257_v36 = vsub.f32 %v2797_v8, %v1229_v30  ;;  %1986 = vlog2.f32 %v1213_v32 }
 0x40a   : > { %v1975_v37 = vpop.eup %1974  ;;  %v1258_v7 = vsub.f32 %v2801_v13, %v1231_v31  ;;  %1988 = vlog2.f32 %v1215_v35 }
 0x40b   : > { %v1977_v38 = vpop.eup %1976  ;;  %1273 = vst [vmem:[%s2618_s4 + $0x18] sm:$0xff] %v1257_v36  ;;  %v1233_v2 = vmul.f32 0.6931472, %v1975_v37 }
 0x40c   : > { %1274 = vst [vmem:[%s2618_s4 + $0x20] sm:$0xff] %v1258_v7  ;;  %v1235_v39 = vmul.f32 0.6931472, %v1977_v38  ;;  %v1217_v40 = vpop.xlane.xlu1 %1216  ;;  %v1219_v43 = vpop.xlane.xlu0 %1218 }
 0x40d   : > { %v1259_v44 = vsub.f32 %v2803_v14, %v1233_v2  ;;  %1990 = vlog2.f32 %v1217_v40 }
 0x40e   : > { %v1979_v45 = vpop.eup %1978  ;;  %v1260_v8 = vsub.f32 %v2807_v19, %v1235_v39  ;;  %1992 = vlog2.f32 %v1219_v43 }
 0x40f   : > { %v1981_v46 = vpop.eup %1980  ;;  %1275 = vst [vmem:[%s2618_s4 + $0x28] sm:$0xff] %v1259_v44  ;;  %v1237_v13 = vmul.f32 0.6931472, %v1979_v45 }
 0x410   : > { %1276 = vst [vmem:[%s2618_s4 + $0x30] sm:$0xff] %v1260_v8  ;;  %v1239_v47 = vmul.f32 0.6931472, %v1981_v46  ;;  %v1221_v48 = vpop.xlane.xlu1 %1220 }
 0x411   : > { %v1261_v51 = vsub.f32 %v2809_v20, %v1237_v13  ;;  %1994 = vlog2.f32 %v1221_v48 }
 0x412   : > { %v1983_v52 = vpop.eup %1982  ;;  %v1262_v14 = vsub.f32 %v2813_v25, %v1239_v47 }
 0x413   : > { %v1985_v53 = vpop.eup %1984  ;;  %1277 = vst [vmem:[%s2618_s4 + $0x38] sm:$0xff] %v1261_v51  ;;  %v1241_v54 = vmul.f32 0.6931472, %v1983_v52 }
 0x414   : > { %1278 = vst [vmem:[%s2618_s4 + $0x40] sm:$0xff] %v1262_v14  ;;  %v1243_v19 = vmul.f32 0.6931472, %v1985_v53 }
 0x415   : > { %v1263_v55 = vsub.f32 %v2815_v26, %v1241_v54 }
 0x416   : > { %v1987_v56 = vpop.eup %1986  ;;  %v1264_v57 = vsub.f32 %v2819_v33, %v1243_v19 }
 0x417   : > { %v1989_v58 = vpop.eup %1988  ;;  %1279 = vst [vmem:[%s2618_s4 + $0x48] sm:$0xff] %v1263_v55  ;;  %v1245_v20 = vmul.f32 0.6931472, %v1987_v56 }
 0x418   : > { %1280 = vst [vmem:[%s2618_s4 + $0x50] sm:$0xff] %v1264_v57  ;;  %v1247_v59 = vmul.f32 0.6931472, %v1989_v58 }
 0x419   : > { %v1265_v25 = vsub.f32 %v2821_v34, %v1245_v20 }
 0x41a   : > { %v1991_v60 = vpop.eup %1990  ;;  %v1266_v61 = vsub.f32 %v2826_v41, %v1247_v59 }
 0x41b   : > { %v1993_v62 = vpop.eup %1992  ;;  %1281 = vst [vmem:[%s2618_s4 + $0x58] sm:$0xff] %v1265_v25  ;;  %v1249_v63 = vmul.f32 0.6931472, %v1991_v60 }
 0x41c   : > { %1282 = vst [vmem:[%s2618_s4 + $0x60] sm:$0xff] %v1266_v61  ;;  %v1251_v26 = vmul.f32 0.6931472, %v1993_v62 }
 0x41d   : > { %v1267_v33 = vsub.f32 %v2829_v42, %v1249_v63 }
 0x41e   : > { %v1995_v0 = vpop.eup %1994  ;;  %v1268_v3 = vsub.f32 %v2834_v49, %v1251_v26 }
 0x41f   : > { %1283 = vst [vmem:[%s2618_s4 + $0x68] sm:$0xff] %v1267_v33  ;;  %v1253_v4 = vmul.f32 0.6931472, %v1995_v0 }
 0x420   : > { %1284 = vst [vmem:[%s2618_s4 + $0x70] sm:$0xff] %v1268_v3 }
 0x421   : > { %v1269_v5 = vsub.f32 %v2837_v50, %v1253_v4 }
 0x423   : > { %1285 = vst [vmem:[%s2618_s4 + $0x78] sm:$0xff] %v1269_v5 }
 0x424 PF: > { %s3075_s16 = sld [smem:[#allocation21_spill]]  ;;  %s1302_s25 = sshll.u32 %s2618_s4, 4  ;;  %s2877_s25 = int_to_ptr.vmem [resolvable:$true] %s1302_s25 }
 0x425   : > { %s3078_s18 = sld [smem:[#allocation26_spill]]  ;;  %s2886_s21 = scalar_lea.sflag [#allocation7], %s343_s1 }
 0x426   : > { %s3079_s28 = sld [smem:[#allocation36_spill]]  ;;  %s2080_s30 = scalar_lea.vmem %s2877_s25, 2048 }
 0x427   : > { %p2081_p9 = scmp.ne.s32.totalorder %s2877_s25, %s2080_s30  ;;  %s2283_s4 = smov [#allocation11]  }
 0x428   : > { %s2084_s29 = sshll.u32 %s2283_s4, 4  ;;  %s2085_s29 = int_to_ptr.vmem [resolvable:$false] %s2084_s29 }
 0x429   : > { %s2086_s22 = scalar_lea.vmem %s2085_s29, 4096  ;;  %p2087_p13 = scmp.lt.s32.totalorder %s2877_s25, %s2085_s29 }
 0x42a   : > { %s3118_s16 = smov (!%p1047_p1, %s3075_s16), 0  ;;  %p2088_p11 = scmp.lt.s32.totalorder %s2086_s22, %s2080_s30 }
 0x42b   : > { %s1547_s27 = sshll.u32 %s3118_s16, 11  ;;  %p3081_p10 = scmp.ne.s32.totalorder %s3078_s18, 0 }
 0x42c   : > { %s3080_s3 = smov %s3079_s28  ;;  %s2882_s24 = scalar_lea.hbm %s3079_s28, %s1547_s27 }
 0x42d   : > { %p2082_p12 = pnand %p2081_p9, %p3081_p10  ;;  %p2089_p5 = por %p2088_p11, %p2087_p13 }
 0x42f   : > { %p2083_p0 = pneg %p2082_p12 }
 0x431   : > { %p2090_p7 = pnand %p2089_p5, %p2083_p0 }
 0x433   : > { %2093 = shalt.err (!%p2090_p7)
}
 0x434   : > { %s2094_s1 = scalar_lea.hbm %s2882_s24, 2048  ;;  %s2098_s2 = scalar_lea.hbm %s3080_s3, 6144 }
 0x435   : > { %p2095_p4 = scmp.ne.s32.totalorder %s2882_s24, %s2094_s1  ;;  %p2099_p6 = scmp.lt.s32.totalorder %s2882_s24, %s3080_s3 }
 0x436   : > { %p2100_p1 = scmp.lt.s32.totalorder %s2098_s2, %s2094_s1 }
 0x437   : > { %p2096_p2 = pnand %p2095_p4, %p3081_p10 }
 0x438   : > { %p2101_p3 = por %p2100_p1, %p2099_p6 }
 0x439   : > { %p2097_p8 = pneg %p2096_p2 }
 0x43b   : > { %p2102_p9 = pnand %p2101_p3, %p2097_p8 }
 0x43d   : > { %2105 = shalt.err (!%p2102_p9)
}
 0x43e   : > { %s2284_s10 = smov 128   ;;  %s2285_s28 = smov 8  }
 0x43f   : > { %1730 = dma.vmem_to_hbm [thread:$0]  (%p3081_p10), %s2877_s25, 2048, %s2882_s24, %s2886_s21, %s2284_s10, %s2284_s10, %s2285_s28  }
 0x440 PF: > { %s3082_s30 = sld [smem:[#allocation16_spill]]  ;;  %p1747_p12 = scmp.ge.s32.totalorder %s2272_s7, 2 }
 0x441   : > { %s3083_s4 = sld [smem:[#allocation27_spill]] }
 0x446   : > { %s1317_s29 = sand.u32 1, %s3082_s30  }
 0x447   : > { %p3084_p0 = scmp.ne.s32.totalorder %s3083_s4, 0  ;;  %s1318_s22 = scalar_lea.sflag [#allocation7], %s1317_s29 }
 0x449   : > { %p1743_p13 = pnand %p1747_p12, %p3084_p0 }
 0x44b   : > { %p1744_p11 = pneg %p1743_p13 }
 0x44d   : > { %2195 = dma.done.wait (%p1744_p11), %s1318_s22, 2048  }
 0x44e   : > { %2197 = vsyncadd (%p1744_p11), %s1318_s22, 4294965248  ;;  %s23_s7 = sadd.s32 1, %s2272_s7   ;;  %s3086_s15 = sld [smem:[#allocation17_spill]] }
 0x44f   : > { %p2914_p5 = scmp.ge.s32.totalorder %s23_s7, 20   ;;  %s3087_s21 = sld [smem:[#allocation18_spill]] }
 0x450   : > { %s3088_s25 = sld [smem:[#allocation32_spill]]  ;;  %s3092_s16 = smov %s2208_s17 }
 0x451   : > { %s3089_s24 = sld [smem:[#allocation19_spill]]  ;;  %s3093_s17 = smov %s2525_s8 }
 0x452   : > { %s3090_s27 = sld [smem:[#allocation23_spill]]  ;;  %s3094_s18 = smov %s2216_s19 }
 0x453   : > { %s3091_s30 = sld [smem:[#allocation30_spill]]  ;;  %s3095_s19 = smov %s2220_s20 }
 0x454   : > { %s3096_s20 = smov %s2551_s14  ;;  %s3097_s22 = smov %s2232_s23 }
 0x455   : > { %s3101_s28 = smov %s2264_s5  ;;  %s3102_s29 = smov %s2268_s6 }
 0x456   : > { %s3098_s23 = smov %s3088_s25  ;;  %s3099_s25 = smov %s2244_s26 }
 0x457   : > { %s3100_s26 = smov %s2521_s9  ;;  %s3103_s5 = smov %s3110_s11 }
 0x458   : > { %s3104_s6 = smov %s3114_s12  ;;  %22 = sbr.rel (!%p2914_p5) target bundleno = 20 (0x14), region = 128 }
 0x45d   :  { %1323 = vsyncpa [#allocation6], 1 }
 0x45e   :  { %1325 = vsyncpa [#allocation6 + $0x1], 1 }
 0x45f   :  { %1326 = vsyncpa [#allocation9], 1 }
 0x460   :  { %1328 = vsyncpa [#allocation9 + $0x1], 1 }
 0x461   :  { %1329 = vsyncpa [#allocation7], 1 }
 0x462   :  { %1331 = vsyncpa [#allocation7 + $0x1], 1 }

</bundles_post_ra>
